<compile_context>
chip_gen: v7x
topology: tpu7x:2x2x1
jax: 0.10.0
libtpu: 0.0.40
codegen_flags: <defaults>
</compile_context>

<pallas_src>
import functools

import jax
import jax.numpy as jnp
from jax import lax
from jax.experimental import pallas as pl
from jax.experimental.pallas import tpu as pltpu


def _round_up(x, m):
    return ((x + m - 1) // m) * m


def _choose_tk(vocab_size):
    """Fixed reduction-tile width: big, lane-dense DMAs, no divisibility demand."""
    v128 = _round_up(vocab_size, 128)
    for cand in (4096, 2048, 1024, 512):
        if cand <= v128:
            return cand
    return v128  # tiny vocab: a single 128-multiple tile


def _choose_tb(batch):
    for cand in (512, 256, 128, 64, 32, 16, 8):
        if cand <= batch and batch % cand == 0:
            return cand
    return batch


def _padded_vmem_bytes(shape2d, dtype):
    """VMEM footprint of a 2-D tile after (sublane, lane) layout padding."""
    itemsize = jnp.dtype(dtype).itemsize
    sublane = {1: 32, 2: 16, 4: 8}.get(itemsize, 8)
    rows, cols = shape2d
    return _round_up(rows, sublane) * _round_up(cols, 128) * itemsize


def mlr_bow_kernel(x_ref, w_ref, b_ref, o_ref, *, vocab_size, tk):
    # x_ref: (TB, TK) narrow counts, w_ref: (TK, L) bf16 (zero-padded rows),
    # b_ref: (1, L) f32 bias, o_ref: (TB, L) f32 output == resident accumulator.
    k = pl.program_id(1)

    @pl.when(k == 0)
    def _init():
        o_ref[...] = jnp.zeros_like(o_ref)

    # Widen the narrow streamed counts to bf16 for the MXU (free VPU filler under
    # a DMA-bound kernel); accumulate in f32 directly in the resident output tile.
    x = x_ref[...].astype(jnp.bfloat16)
    if vocab_size % tk != 0:
        # Ragged last K-tile: zero the out-of-range columns so OOB garbage
        # (possibly NaN/Inf) never contaminates the accumulator.
        col = k * tk + lax.broadcasted_iota(jnp.int32, x.shape, 1)
        x = jnp.where(col < vocab_size, x, jnp.zeros_like(x))
    o_ref[...] += jnp.dot(x, w_ref[...], preferred_element_type=jnp.float32)

    @pl.when(k == pl.num_programs(1) - 1)
    def _finalize():
        scores = o_ref[...] + b_ref[...]              # f32, bias broadcast over rows
        m = jnp.max(scores, axis=1, keepdims=True)    # log_softmax over labels (dim=1)
        shifted = scores - m
        lse = jnp.log(jnp.sum(jnp.exp(shifted), axis=1, keepdims=True))
        o_ref[...] = (shifted - lse).astype(o_ref.dtype)


def prepare_params(weight, bias):
    """One-time parameter prep (outside the per-call hot path).

    weight: (L, V) PyTorch nn.Linear layout -> (V_pad, L) bf16, zero-padded so
            V_pad is a multiple of the fixed reduction tile TK.
    bias:   (L,) -> (1, L) f32.
    """
    weight = jnp.asarray(weight)
    L, V = weight.shape
    tk = _choose_tk(V)
    v_pad = _round_up(V, tk)
    w_vl = jnp.zeros((v_pad, L), jnp.bfloat16).at[:V, :].set(
        weight.T.astype(jnp.bfloat16))
    b2 = jnp.asarray(bias, dtype=jnp.float32).reshape(1, -1)
    return w_vl, b2


def mlr_bow_classifier(bow_vec, w_vl, b2):
    """bow_vec: (B, V) narrow counts (bf16/int8/f32); w_vl: (V_pad, L) bf16;
    b2: (1, L) f32  ->  (B, L) f32 log-probabilities."""
    B, V = bow_vec.shape
    V_pad, L = w_vl.shape
    tk = _choose_tk(V)
    assert V_pad == _round_up(V, tk), "w_vl was not produced by prepare_params()"
    assert b2.shape == (1, L)

    tb = _choose_tb(B)
    grid_b, grid_k = B // tb, V_pad // tk   # batch "parallel", reduction "arbitrary"

    # Layout-aware VMEM need: every pipelined operand (incl. the resident output
    # tile) is double-buffered by the BlockSpec pipeline.
    def tile_need(tb_, tk_):
        return 2 * (_padded_vmem_bytes((tb_, tk_), bow_vec.dtype)
                    + _padded_vmem_bytes((tk_, L), w_vl.dtype)
                    + _padded_vmem_bytes((1, L), jnp.float32)
                    + _padded_vmem_bytes((tb_, L), jnp.float32))

    try:
        vmem_cap = int(pltpu.get_tpu_info().vmem_capacity_bytes)
    except Exception:  # conservative (v7x-sized) default if the query is unavailable
        vmem_cap = 64 * 1024 * 1024
    cap = min(vmem_cap - 16 * 1024 * 1024, 96 * 1024 * 1024)

    need = tile_need(tb, tk)
    while need > cap and tb > 8:            # only reachable for extreme shapes
        tb = max(8, tb // 2)
        grid_b = (B + tb - 1) // tb
        need = tile_need(tb, tk)

    # Never declare less than the (padded) need; grow toward the chip budget so
    # the bigger tiles stay legal on v7x (64 MiB) and fatter on v5e/v6e (128 MiB).
    vmem_limit = int(min(cap, max(32 * 1024 * 1024, 2 * need)))
    vmem_limit = int(max(vmem_limit, need + 4 * 1024 * 1024))

    kernel = functools.partial(mlr_bow_kernel, vocab_size=V, tk=tk)

    return pl.pallas_call(
        kernel,
        out_shape=jax.ShapeDtypeStruct((B, L), jnp.float32),
        grid_spec=pltpu.PrefetchScalarGridSpec(
            num_scalar_prefetch=0,
            grid=(grid_b, grid_k),
            in_specs=[
                pl.BlockSpec((tb, tk), lambda i, k: (i, k)),   # x tile (ragged tail masked)
                pl.BlockSpec((tk, L), lambda i, k: (k, 0)),    # W tile (zero-padded rows)
                pl.BlockSpec((1, L), lambda i, k: (0, 0)),     # bias
            ],
            out_specs=pl.BlockSpec((tb, L), lambda i, k: (i, 0)),  # resident accumulator
        ),
        compiler_params=pltpu.CompilerParams(
            dimension_semantics=("parallel", "arbitrary"),
            vmem_limit_bytes=vmem_limit,
        ),
    )(bow_vec, w_vl, b2)


if __name__ == "__main__":
    # Small shapes consistent with the module.  vocab_size is deliberately NOT a
    # multiple of the reduction tile so the zero-padded-W + ragged-tail-mask path
    # runs, and is large enough that the reduction grid has >1 step.
    batch, vocab_size, num_labels = 8, 5000, 8

    key = jax.random.PRNGKey(0)
    k_x, k_w, k_b = jax.random.split(key, 3)

    # nn.Linear default init: U(-1/sqrt(fan_in), 1/sqrt(fan_in)).
    bound = 1.0 / (vocab_size ** 0.5)
    weight = jax.random.uniform(k_w, (num_labels, vocab_size),
                                minval=-bound, maxval=bound, dtype=jnp.float32)
    bias = jax.random.uniform(k_b, (num_labels,),
                              minval=-bound, maxval=bound, dtype=jnp.float32)

    # Synthetic bag-of-words counts, stored NARROW (bf16; exact for counts < 256)
    # per the input contract -- this is what halves the HBM traffic on x.
    bow_vec = jax.random.randint(k_x, (batch, vocab_size), 0, 4).astype(jnp.bfloat16)

    w_vl, b2 = prepare_params(weight, bias)        # one-time, outside the hot path
    out = jax.block_until_ready(mlr_bow_classifier(bow_vec, w_vl, b2))
    assert out.shape == (batch, num_labels)
    assert bool(jnp.all(jnp.isfinite(out)))

    # Faithful reference: the same bf16 weights / bf16 counts the kernel consumes,
    # f32 math (counts 0..3 are exact in bf16).
    x_f32 = bow_vec.astype(jnp.float32)
    w_f32 = w_vl[:vocab_size, :].astype(jnp.float32)
    ref_bf16 = jax.nn.log_softmax(x_f32 @ w_f32 + bias, axis=1)
    assert jnp.allclose(out, ref_bf16, atol=2e-2, rtol=2e-2), \
        float(jnp.max(jnp.abs(out - ref_bf16)))

    # Loose sanity check against the pure-f32 PyTorch-equivalent module
    # (bf16 weight rounding ~1e-2, immaterial after log_softmax).
    ref_f32 = jax.nn.log_softmax(x_f32 @ weight.T + bias, axis=1)
    assert float(jnp.max(jnp.abs(out - ref_f32))) < 0.1

    # log_softmax rows must be (log-)normalized.
    assert jnp.allclose(jnp.sum(jnp.exp(out), axis=1), 1.0, atol=1e-3)

    print("KERNEL_OK")
</pallas_src>

<mosaic_0001>
module attributes {stable_mosaic.version = 11 : i64} {
  func.func @mlr_bow_kernel(%arg0: i32, %arg1: i32, %arg2: memref<8x4096xbf16, #tpu.memory_space<vmem>>, %arg3: memref<4096x8xbf16, #tpu.memory_space<vmem>>, %arg4: memref<1x8xf32, #tpu.memory_space<vmem>>, %arg5: memref<8x8xf32, #tpu.memory_space<vmem>>) attributes {dimension_semantics = [#tpu.dimension_semantics<parallel>, #tpu.dimension_semantics<arbitrary>], iteration_bounds = array<i64: 1, 2>, scalar_prefetch = 0 : i64, scratch_operands = 0 : i64, tpu.core_type = #tpu.core_type<tc>, window_params = [{transform_indices = @transform_0, window_bounds = array<i64: 8, 4096>}, {transform_indices = @transform_1, window_bounds = array<i64: 4096, 8>}, {pipeline_mode = #tpu.pipeline_mode<synchronous>, transform_indices = @transform_2, window_bounds = array<i64: 1, 8>}, {transform_indices = @transform_3, window_bounds = array<i64: 8, 8>}]} {
    %c0_i32 = arith.constant 0 : i32
    %0 = arith.cmpi eq, %arg1, %c0_i32 : i32
    %1 = arith.extui %0 : i1 to i32
    %c0_i32_0 = arith.constant 0 : i32
    %2 = arith.cmpi ne, %1, %c0_i32_0 : i32
    scf.if %2 {
      %cst_10 = arith.constant 0.000000e+00 : f32
      %20 = vector.broadcast %cst_10 : f32 to vector<8x8xf32>
      %c0_11 = arith.constant 0 : index
      %c0_12 = arith.constant 0 : index
      %21 = vector.load %arg5[%c0_11, %c0_12] : memref<8x8xf32, #tpu.memory_space<vmem>>, vector<8x8xf32>
      tpu.vector_store %arg5[%c0_11, %c0_12], %20 {strides = array<i32>} : memref<8x8xf32, #tpu.memory_space<vmem>>, vector<8x8xf32>,
    } else {
    }
    %c0 = arith.constant 0 : index
    %c0_1 = arith.constant 0 : index
    %3 = vector.load %arg2[%c0, %c0_1] : memref<8x4096xbf16, #tpu.memory_space<vmem>>, vector<8x4096xbf16>
    %c4096_i32 = arith.constant 4096 : i32
    %4 = arith.muli %arg1, %c4096_i32 : i32
    %5 = tpu.iota {dimensions = array<i32: 1>} : vector<8x4096xi32>
    %6 = vector.broadcast %4 : i32 to vector<8x4096xi32>
    %7 = arith.addi %6, %5 : vector<8x4096xi32>
    %c5000_i32 = arith.constant 5000 : i32
    %8 = vector.broadcast %c5000_i32 : i32 to vector<8x4096xi32>
    %9 = arith.cmpi slt, %7, %8 : vector<8x4096xi32>
    %cst = arith.constant 0.000000e+00 : bf16
    %10 = vector.broadcast %cst : bf16 to vector<8x4096xbf16>
    %11 = arith.select %9, %3, %10 : vector<8x4096xi1>, vector<8x4096xbf16>
    %c0_2 = arith.constant 0 : index
    %c0_3 = arith.constant 0 : index
    %12 = vector.load %arg5[%c0_2, %c0_3] : memref<8x8xf32, #tpu.memory_space<vmem>>, vector<8x8xf32>
    %c0_4 = arith.constant 0 : index
    %c0_5 = arith.constant 0 : index
    %13 = vector.load %arg3[%c0_4, %c0_5] : memref<4096x8xbf16, #tpu.memory_space<vmem>>, vector<4096x8xbf16>
    %cst_6 = arith.constant dense<0.000000e+00> : vector<8x8xf32>
    %14 = tpu.matmul %11, %13, %cst_6 {dimension_numbers = #tpu.dot_dimension_numbers<[1], [0], [0], [1], [0, 0, 1, 1], [], []>} : vector<8x4096xbf16>, vector<4096x8xbf16>, vector<8x8xf32> -> vector<8x8xf32>
    %15 = arith.addf %12, %14 : vector<8x8xf32>
    %c0_7 = arith.constant 0 : index
    %c0_8 = arith.constant 0 : index
    %16 = vector.load %arg5[%c0_7, %c0_8] : memref<8x8xf32, #tpu.memory_space<vmem>>, vector<8x8xf32>
    tpu.vector_store %arg5[%c0_7, %c0_8], %15 {strides = array<i32>} : memref<8x8xf32, #tpu.memory_space<vmem>>, vector<8x8xf32>,
    %c1_i32 = arith.constant 1 : i32
    %17 = arith.cmpi eq, %arg1, %c1_i32 : i32
    %18 = arith.extui %17 : i1 to i32
    %c0_i32_9 = arith.constant 0 : i32
    %19 = arith.cmpi ne, %18, %c0_i32_9 : i32
    scf.if %19 {
      %c0_10 = arith.constant 0 : index
      %c0_11 = arith.constant 0 : index
      %20 = vector.load %arg5[%c0_10, %c0_11] : memref<8x8xf32, #tpu.memory_space<vmem>>, vector<8x8xf32>
      %c0_12 = arith.constant 0 : index
      %c0_13 = arith.constant 0 : index
      %21 = vector.load %arg4[%c0_12, %c0_13] : memref<1x8xf32, #tpu.memory_space<vmem>>, vector<1x8xf32>
      %22 = vector.broadcast %21 : vector<1x8xf32> to vector<8x8xf32>
      %23 = arith.addf %20, %22 : vector<8x8xf32>
      %cst_14 = arith.constant dense<0xFF800000> : vector<8xf32>
      %24 = vector.multi_reduction <maximumf>, %23, %cst_14 [1] : vector<8x8xf32> to vector<8xf32>
      %25 = vector.shape_cast %24 : vector<8xf32> to vector<8x1xf32>
      %26 = vector.broadcast %25 : vector<8x1xf32> to vector<8x8xf32>
      %27 = arith.subf %23, %26 : vector<8x8xf32>
      %28 = math.exp %27 : vector<8x8xf32>
      %cst_15 = arith.constant dense<0.000000e+00> : vector<8xf32>
      %29 = vector.multi_reduction <add>, %28, %cst_15 [1] : vector<8x8xf32> to vector<8xf32>
      %30 = vector.shape_cast %29 : vector<8xf32> to vector<8x1xf32>
      %31 = math.log %30 : vector<8x1xf32>
      %32 = vector.broadcast %31 : vector<8x1xf32> to vector<8x8xf32>
      %33 = arith.subf %27, %32 : vector<8x8xf32>
      %c0_16 = arith.constant 0 : index
      %c0_17 = arith.constant 0 : index
      %34 = vector.load %arg5[%c0_16, %c0_17] : memref<8x8xf32, #tpu.memory_space<vmem>>, vector<8x8xf32>
      tpu.vector_store %arg5[%c0_16, %c0_17], %33 {strides = array<i32>} : memref<8x8xf32, #tpu.memory_space<vmem>>, vector<8x8xf32>,
    } else {
    }
    return
  }
  func.func @transform_0(%arg0: i32, %arg1: i32) -> (i32, i32) {
    %c0_i32 = arith.constant 0 : i32
    return %arg0, %arg1 : i32, i32
  }
  func.func @transform_1(%arg0: i32, %arg1: i32) -> (i32, i32) {
    %c0_i32 = arith.constant 0 : i32
    %c0_i32_0 = arith.constant 0 : i32
    return %arg1, %c0_i32 : i32, i32
  }
  func.func @transform_2(%arg0: i32, %arg1: i32) -> (i32, i32) {
    %c0_i32 = arith.constant 0 : i32
    %c0_i32_0 = arith.constant 0 : i32
    %c0_i32_1 = arith.constant 0 : i32
    return %c0_i32, %c0_i32_0 : i32, i32
  }
  func.func @transform_3(%arg0: i32, %arg1: i32) -> (i32, i32) {
    %c0_i32 = arith.constant 0 : i32
    %c0_i32_0 = arith.constant 0 : i32
    return %arg0, %c0_i32 : i32, i32
  }
}

</mosaic_0001>

<bundles_post_ra>
// kernel: tpu_custom_call.1
= control target key start
LH: loop header
LB: loop body
LE: loop exit
PB: predicated region body
PF: predicated region fallthrough
CT: control target
= control target key end

     0   :  { %8 = vsyncpa [#allocation3], 0  ;;  %s4317_s12 = smov 0   ;;  %s4319_s13 = smov 0   ;;  %s4740_s0 = inlined_call_operand.vmem [shape: bf16[8,5000], index: 0, kind: input, shape index: {}]   ;;  %s4741_s1 = inlined_call_operand.vmem [shape: bf16[8192,8], index: 1, kind: input, shape index: {}]   ;;  %s4742_s2 = inlined_call_operand.vmem [shape: f32[1,8], index: 2, kind: input, shape index: {}]   ;;  %s4743_s3 = inlined_call_operand.hbm [shape: f32[8,8], index: 3, kind: output, shape index: {}]  }
   0x1   :  { %s4321_s14 = smov 0  }
   0x2 LB: > { %s3293_s15 = sadd.s32 4294967295, %s4293_s14   ;;  %s23_s16 = sadd.s32 1, %s4289_s13  ;;  %s4293_s14 = sphi %s4321_s14, %s14_s14   ;;  %s4289_s13 = sphi %s4319_s13, %s4746_s13   ;;  %s4285_s12 = sphi %s4317_s12, %s4745_s12  }
   0x3   : > { %p24_p0 = scmp.ge.s32.totalorder %s23_s16, 2  ;;  %p3296_p1 = scmp.ge.s32.totalorder %s4293_s14, 1 }
   0x4   : > { %p176_p2 = scmp.lt.s32.totalorder %s4293_s14, 3 }
   0x5   : > { %s4748_s16 = smov (%p24_p0, %s23_s16), 0 }
   0x6   : > { %p177_p3 = pnand %p3296_p1, %p176_p2 }
   0x7   : > { %s3297_s17 = sshll.u32 (!%p177_p3), %s4285_s12, 5  ;;  %s3299_s18 = sshll.u32 (!%p177_p3), %s4285_s12, 9 }
   0x8   : > { %180 = sbr.rel (%p177_p3) target bundleno = 856 (0x358), region = 32  ;;  %p215_p4 = scmp.lt.s32.totalorder (!%p177_p3), %s3297_s17, 39 }
   0x9   : > { %p227_p5 = scmp.lt.s32.totalorder (!%p177_p3), %s3299_s18, 1023  ;;  %p3301_p6 = scmp.ne.s32.totalorder (!%p177_p3), %s4285_s12, 0 }
   0xf   : > { %s4750_s17 = smov (!%p215_p4, %s3297_s17), 39  ;;  %s4752_s18 = smov (!%p227_p5, %s3299_s18), 1023 }
  0x10   : > { %s3298_s19 = sshll.u32 %s4750_s17, 2  ;;  %s3300_s23 = sshll.u32 %s4752_s18, 2  ;;  %vm237_vm0 = vcmask (!%p3301_p6), 64512   ;;  %v4295_v0 = vmov (!%p3301_p6), 0.0  }
  0x11   : > { %s4343_s22 = scalar_lea.vmem %s4740_s0, %s3298_s19  ;;  %s4348_s26 = scalar_lea.vmem %s4741_s1, %s3300_s23  ;;  %238 = vst.msk [vmem:[#allocation2] sm:$0xff] (!%p3301_p6), %vm237_vm0, %v4295_v0 }
  0x12   : > { %236 = sbr.rel (%p3301_p6) target bundleno = 25 (0x19), region = 36 }
  0x19 PF: > { %v3981_v1 = vld [vmem:[%s4348_s26 + $0x40] sm:$0xff]   ;;  %v3985_v5 = vld [vmem:[%s4348_s26 + $0x48] sm:$0xff]   ;;  %v3989_v9 = vld [vmem:[%s4348_s26 + $0x50] sm:$0xff]   ;;  %v256_v14 = vlaneseq  ;;  %s3302_s27 = sshll.u32 %s4285_s12, 12  ;;  %p3591_p7 = scmp.ne.s32.totalorder %s4285_s12, 1 }
  0x1a   : > { %v3982_v2 = vld [vmem:[%s4348_s26 + $0xc0] sm:$0xff]   ;;  %3597 = vmatprep.subr.bf16.mxu0 %v3981_v1  ;;  %v3986_v6 = vld [vmem:[%s4348_s26 + $0xc8] sm:$0xff]   ;;  %v3990_v10 = vld [vmem:[%s4348_s26 + $0xd0] sm:$0xff]   ;;  %v4376_v25 = vstv %s3302_s27 }
  0x1b   : > { %v3983_v3 = vld [vmem:[%s4348_s26] sm:$0xff]   ;;  %3619 = vmatprep.subr.bf16.mxu1 %v3982_v2  ;;  %v3987_v7 = vld [vmem:[%s4348_s26 + $0x8] sm:$0xff]   ;;  %v3991_v11 = vld [vmem:[%s4348_s26 + $0x10] sm:$0xff]   ;;  %v4368_v19 = vand.u32 127, %v256_v14 }
  0x1c   : > { %v3984_v4 = vld [vmem:[%s4348_s26 + $0x80] sm:$0xff]   ;;  %3598 = vmatpush3.bf16.msra.mxu0 %v3983_v3  ;;  %v3988_v8 = vld [vmem:[%s4348_s26 + $0x88] sm:$0xff]   ;;  %v3992_v12 = vld [vmem:[%s4348_s26 + $0x90] sm:$0xff]  }
  0x1d   : > { %3620 = vmatpush3.bf16.msra.mxu1 %v3984_v4  ;;  %3599 = vmatprep.subr.bf16.mxu0 %v3985_v5  ;;  %v3993_v13 = vld [vmem:[%s4348_s26 + $0x58] sm:$0xff]   ;;  %v3997_v18 = vld [vmem:[%s4348_s26 + $0x60] sm:$0xff]   ;;  %v4001_v23 = vld [vmem:[%s4348_s26 + $0x68] sm:$0xff]   ;;  %v258_v24 = vadd.s32 128, %v4368_v19  ;;  %v259_v27 = vadd.s32 256, %v4368_v19  ;;  %v260_v29 = vadd.s32 384, %v4368_v19  ;;  %v290_v31 = vadd.s32 %v4376_v25, %v4368_v19 }
  0x1e   : > { %3621 = vmatprep.subr.bf16.mxu1 %v3986_v6  ;;  %v3994_v15 = vld [vmem:[%s4348_s26 + $0xd8] sm:$0xff]   ;;  %v3998_v20 = vld [vmem:[%s4348_s26 + $0xe0] sm:$0xff]   ;;  %v4002_v26 = vld [vmem:[%s4348_s26 + $0xe8] sm:$0xff]   ;;  %v261_v6 = vadd.s32 512, %v4368_v19 }
  0x1f   : > { %v3995_v16 = vld [vmem:[%s4348_s26 + $0x18] sm:$0xff]   ;;  %v3999_v21 = vld [vmem:[%s4348_s26 + $0x20] sm:$0xff]   ;;  %v4003_v28 = vld [vmem:[%s4348_s26 + $0x28] sm:$0xff]   ;;  %v291_v33 = vadd.s32 %v4376_v25, %v258_v24  ;;  %v292_v35 = vadd.s32 %v4376_v25, %v259_v27  ;;  %v293_v37 = vadd.s32 %v4376_v25, %v260_v29  ;;  %vm322_vm1 = vcmp.lt.s32.totalorder %v290_v31, 5000 }
  0x20   : > { %3600 = vmatpush3.bf16.msra.mxu0 %v3987_v7  ;;  %v3996_v17 = vld [vmem:[%s4348_s26 + $0x98] sm:$0xff]   ;;  %v4000_v22 = vld [vmem:[%s4348_s26 + $0xa0] sm:$0xff]   ;;  %v4004_v30 = vld [vmem:[%s4348_s26 + $0xa8] sm:$0xff]   ;;  %v294_v14 = vadd.s32 %v4376_v25, %v261_v6 }
  0x21   : > { %3622 = vmatpush3.bf16.msra.mxu1 %v3988_v8  ;;  %3601 = vmatprep.subr.bf16.mxu0 %v3989_v9  ;;  %v4005_v32 = vld [vmem:[%s4348_s26 + $0x70] sm:$0xff]   ;;  %v4009_v39 = vld [vmem:[%s4348_s26 + $0x78] sm:$0xff]   ;;  %vm323_vm2 = vcmp.lt.s32.totalorder %v291_v33, 5000  ;;  %vm324_vm3 = vcmp.lt.s32.totalorder %v292_v35, 5000  ;;  %vm325_vm4 = vcmp.lt.s32.totalorder %v293_v37, 5000  ;;  %v239_v43 = vld [vmem:[%s4343_s22] sm:$0xff] }
  0x22   : > { %3623 = vmatprep.subr.bf16.mxu1 %v3990_v10  ;;  %v4006_v34 = vld [vmem:[%s4348_s26 + $0xf0] sm:$0xff]   ;;  %v4010_v40 = vld [vmem:[%s4348_s26 + $0xf8] sm:$0xff]   ;;  %vm354_vm5 = vmpackc.low %vm323_vm2, %vm322_vm1  ;;  %v262_v8 = vadd.s32 640, %v4368_v19  ;;  %v263_v10 = vadd.s32 768, %v4368_v19  ;;  %vm326_vm7 = vcmp.lt.s32.totalorder %v294_v14, 5000 }
  0x23   : > { %v4007_v36 = vld [vmem:[%s4348_s26 + $0x30] sm:$0xff]   ;;  %v4011_v41 = vld [vmem:[%s4348_s26 + $0x38] sm:$0xff]   ;;  %v240_v44 = vld [vmem:[%s4343_s22 + $0x8] sm:$0xff]  ;;  %v370_v45 = vsel %vm354_vm5, %v239_v43, 0 }
  0x24   : > { %3602 = vmatpush3.bf16.msra.mxu0 %v3991_v11  ;;  %v4008_v38 = vld [vmem:[%s4348_s26 + $0xb0] sm:$0xff]   ;;  %v4012_v42 = vld [vmem:[%s4348_s26 + $0xb8] sm:$0xff]   ;;  %vm355_vm6 = vmpackc.low %vm325_vm4, %vm324_vm3  ;;  %v3303_v46 = vcombine.low %v370_v45, %v370_v45  ;;  %v3304_v47 = vcombine.high %v370_v45, %v370_v45 }
  0x25   : > { %3624 = vmatpush3.bf16.msra.mxu1 %v3992_v12  ;;  %3603 = vmatprep.subr.bf16.mxu0 %v3993_v13  ;;  %v371_v48 = vsel %vm355_vm6, %v240_v44, 0  ;;  %v4013_v49 = vld [vmem:[%s4348_s26 + $0x140] sm:$0xff]   ;;  %v4017_v55 = vld [vmem:[%s4348_s26 + $0x148] sm:$0xff]   ;;  %v4021_v59 = vld [vmem:[%s4348_s26 + $0x150] sm:$0xff]   ;;  %v264_v12 = vadd.s32 896, %v4368_v19 }
  0x26   : > { %3625 = vmatprep.subr.bf16.mxu1 %v3994_v15  ;;  %v3305_v50 = vcombine.low %v371_v48, %v371_v48  ;;  %v3306_v51 = vcombine.high %v371_v48, %v371_v48  ;;  %v4014_v52 = vld [vmem:[%s4348_s26 + $0x1c0] sm:$0xff]   ;;  %2579 = vmatprep.mubr.bf16.mxu0 %v3304_v47  ;;  %v4018_v56 = vld [vmem:[%s4348_s26 + $0x1c8] sm:$0xff]   ;;  %v4022_v60 = vld [vmem:[%s4348_s26 + $0x1d0] sm:$0xff]  }
  0x27   : > { %v4015_v53 = vld [vmem:[%s4348_s26 + $0x100] sm:$0xff]   ;;  %v4019_v57 = vld [vmem:[%s4348_s26 + $0x108] sm:$0xff]   ;;  %v4023_v61 = vld [vmem:[%s4348_s26 + $0x110] sm:$0xff]  }
  0x28   : > { %3604 = vmatpush3.bf16.msra.mxu0 %v3995_v16  ;;  %2619 = vmatprep.mubr.bf16.mxu1 %v3306_v51  ;;  %v4016_v54 = vld [vmem:[%s4348_s26 + $0x180] sm:$0xff]   ;;  %v4020_v58 = vld [vmem:[%s4348_s26 + $0x188] sm:$0xff]   ;;  %v4024_v62 = vld [vmem:[%s4348_s26 + $0x190] sm:$0xff]   ;;  %v295_v16 = vadd.s32 %v4376_v25, %v262_v8 }
  0x29   : > { %3626 = vmatpush3.bf16.msra.mxu1 %v3996_v17  ;;  %3605 = vmatprep.subr.bf16.mxu0 %v3997_v18  ;;  %v4025_v63 = vld [vmem:[%s4348_s26 + $0x158] sm:$0xff]   ;;  %v4029_v3 = vld [vmem:[%s4348_s26 + $0x160] sm:$0xff]   ;;  %v4033_v9 = vld [vmem:[%s4348_s26 + $0x168] sm:$0xff]   ;;  %v296_v18 = vadd.s32 %v4376_v25, %v263_v10 }
  0x2a   : > { %3627 = vmatprep.subr.bf16.mxu1 %v3998_v20  ;;  %v4026_v0 = vld [vmem:[%s4348_s26 + $0x1d8] sm:$0xff]   ;;  %v4030_v4 = vld [vmem:[%s4348_s26 + $0x1e0] sm:$0xff]   ;;  %v4034_v11 = vld [vmem:[%s4348_s26 + $0x1e8] sm:$0xff]   ;;  %vm327_vm8 = vcmp.lt.s32.totalorder %v295_v16, 5000 }
  0x2b   : > { %v4027_v1 = vld [vmem:[%s4348_s26 + $0x118] sm:$0xff]   ;;  %v4031_v5 = vld [vmem:[%s4348_s26 + $0x120] sm:$0xff]   ;;  %v4035_v13 = vld [vmem:[%s4348_s26 + $0x128] sm:$0xff]   ;;  %vm328_vm9 = vcmp.lt.s32.totalorder %v296_v18, 5000 }
  0x2c   : > { %3606 = vmatpush3.bf16.msra.mxu0 %v3999_v21  ;;  %v4028_v2 = vld [vmem:[%s4348_s26 + $0x198] sm:$0xff]   ;;  %v4032_v7 = vld [vmem:[%s4348_s26 + $0x1a0] sm:$0xff]   ;;  %v4036_v15 = vld [vmem:[%s4348_s26 + $0x1a8] sm:$0xff]   ;;  %v297_v21 = vadd.s32 %v4376_v25, %v264_v12 }
  0x2d   : > { %3628 = vmatpush3.bf16.msra.mxu1 %v4000_v22  ;;  %3607 = vmatprep.subr.bf16.mxu0 %v4001_v23  ;;  %v4037_v17 = vld [vmem:[%s4348_s26 + $0x170] sm:$0xff]   ;;  %v4041_v24 = vld [vmem:[%s4348_s26 + $0x178] sm:$0xff]   ;;  %vm356_vm11 = vmpackc.low %vm327_vm8, %vm326_vm7 }
  0x2e   : > { %3629 = vmatprep.subr.bf16.mxu1 %v4002_v26  ;;  %v4038_v20 = vld [vmem:[%s4348_s26 + $0x1f0] sm:$0xff]   ;;  %v4042_v26 = vld [vmem:[%s4348_s26 + $0x1f8] sm:$0xff]   ;;  %vm329_vm10 = vcmp.lt.s32.totalorder %v297_v21, 5000  ;;  %v4045_v35 = vld [vmem:[%s4348_s26 + $0x240] sm:$0xff]  }
  0x2f   : > { %v4039_v22 = vld [vmem:[%s4348_s26 + $0x130] sm:$0xff]   ;;  %v4043_v27 = vld [vmem:[%s4348_s26 + $0x138] sm:$0xff]   ;;  %vm357_vm12 = vmpackc.low %vm329_vm10, %vm328_vm9 }
  0x30   : > { %3608 = vmatpush3.bf16.msra.mxu0 %v4003_v28  ;;  %v4040_v23 = vld [vmem:[%s4348_s26 + $0x1b0] sm:$0xff]   ;;  %v4044_v28 = vld [vmem:[%s4348_s26 + $0x1b8] sm:$0xff]   ;;  %v4051_v43 = vld [vmem:[%s4348_s26 + $0x208] sm:$0xff]  }
  0x31   : > { %3630 = vmatpush3.bf16.msra.mxu1 %v4004_v30  ;;  %3609 = vmatprep.subr.bf16.mxu0 %v4005_v32  ;;  %v241_v29 = vld [vmem:[%s4343_s22 + $0x10] sm:$0xff]  ;;  %v242_v31 = vld [vmem:[%s4343_s22 + $0x18] sm:$0xff]  ;;  %v4052_v44 = vld [vmem:[%s4348_s26 + $0x288] sm:$0xff]  }
  0x32   : > { %3631 = vmatprep.subr.bf16.mxu1 %v4006_v34  ;;  %v372_v30 = vsel %vm356_vm11, %v241_v29, 0  ;;  %v373_v34 = vsel %vm357_vm12, %v242_v31, 0  ;;  %v4053_v45 = vld [vmem:[%s4348_s26 + $0x250] sm:$0xff]   ;;  %v4059_v51 = vld [vmem:[%s4348_s26 + $0x218] sm:$0xff]   ;;  %v244_v14 = vld [vmem:[%s4343_s22 + $0x28] sm:$0xff] }
  0x33   : > { %v3307_v32 = vcombine.low %v372_v30, %v372_v30  ;;  %v3308_v33 = vcombine.high %v372_v30, %v372_v30  ;;  %v3310_v37 = vcombine.high %v373_v34, %v373_v34  ;;  %v4055_v47 = vld [vmem:[%s4348_s26 + $0x210] sm:$0xff]   ;;  %v4074_v10 = vld [vmem:[%s4348_s26 + $0x2f8] sm:$0xff]   ;;  %v4077_v16 = vld [vmem:[%s4348_s26 + $0x340] sm:$0xff]  }
  0x34   : > { %3610 = vmatpush3.bf16.msra.mxu0 %v4007_v36  ;;  %v3309_v36 = vcombine.low %v373_v34, %v373_v34  ;;  %v4056_v48 = vld [vmem:[%s4348_s26 + $0x290] sm:$0xff]   ;;  %v4076_v12 = vld [vmem:[%s4348_s26 + $0x2b8] sm:$0xff]   ;;  %v4078_v21 = vld [vmem:[%s4348_s26 + $0x3c0] sm:$0xff]  }
  0x35   : > { %3632 = vmatpush3.bf16.msra.mxu1 %v4008_v38  ;;  %3611 = vmatprep.subr.bf16.mxu0 %v4009_v39  ;;  %v4046_v38 = vld [vmem:[%s4348_s26 + $0x2c0] sm:$0xff]   ;;  %v4071_v6 = vld [vmem:[%s4348_s26 + $0x230] sm:$0xff]   ;;  %v4083_v29 = vld [vmem:[%s4348_s26 + $0x308] sm:$0xff]  }
  0x36   : > { %3633 = vmatprep.subr.bf16.mxu1 %v4010_v40  ;;  %v4047_v39 = vld [vmem:[%s4348_s26 + $0x200] sm:$0xff]   ;;  %v4072_v8 = vld [vmem:[%s4348_s26 + $0x2b0] sm:$0xff]   ;;  %v4084_v30 = vld [vmem:[%s4348_s26 + $0x388] sm:$0xff]  }
  0x37   : > { %v4048_v40 = vld [vmem:[%s4348_s26 + $0x280] sm:$0xff]   ;;  %v4085_v31 = vld [vmem:[%s4348_s26 + $0x350] sm:$0xff]  }
  0x38   : > { %3612 = vmatpush3.bf16.msra.mxu0 %v4011_v41  ;;  %v4049_v41 = vld [vmem:[%s4348_s26 + $0x248] sm:$0xff]   ;;  %v4088_v34 = vld [vmem:[%s4348_s26 + $0x390] sm:$0xff]  }
  0x39   : > { %3634 = vmatpush3.bf16.msra.mxu1 %v4012_v42  ;;  %3641 = vmatprep.subr.bf16.mxu0 %v4013_v49  ;;  %v4050_v42 = vld [vmem:[%s4348_s26 + $0x2c8] sm:$0xff]   ;;  %v4057_v49 = vld [vmem:[%s4348_s26 + $0x258] sm:$0xff]  }
  0x3a   : > { %3663 = vmatprep.subr.bf16.mxu1 %v4014_v52  ;;  %v4060_v52 = vld [vmem:[%s4348_s26 + $0x298] sm:$0xff]  }
  0x3b   : > { %2580 = vmatmul.mubr.bf16.vlgmr.msra.gmra.mrb[0].mxu0 %v3303_v46  ;;  %v4054_v46 = vld [vmem:[%s4348_s26 + $0x2d0] sm:$0xff]  }
  0x3c   : > { %2620 = vmatmul.mubr.bf16.vlgmr.msra.gmra.mrb[0].mxu1 %v3305_v50  ;;  %3642 = vmatpush3.bf16.msra.mxu0 %v4015_v53  ;;  %v4058_v50 = vld [vmem:[%s4348_s26 + $0x2d8] sm:$0xff]   ;;  %v4061_v53 = vld [vmem:[%s4348_s26 + $0x260] sm:$0xff]  }
  0x3d   : > { %3664 = vmatpush3.bf16.msra.mxu1 %v4016_v54  ;;  %3643 = vmatprep.subr.bf16.mxu0 %v4017_v55  ;;  %v4062_v54 = vld [vmem:[%s4348_s26 + $0x2e0] sm:$0xff]  }
  0x3e   : > { %3665 = vmatprep.subr.bf16.mxu1 %v4018_v56  ;;  %2659 = vmatprep.mubr.bf16.mxu0 %v3308_v33  ;;  %v4063_v55 = vld [vmem:[%s4348_s26 + $0x220] sm:$0xff]   ;;  %v4087_v33 = vld [vmem:[%s4348_s26 + $0x310] sm:$0xff]  }
  0x3f   : > { %2699 = vmatprep.mubr.bf16.mxu1 %v3310_v37  ;;  %v4064_v56 = vld [vmem:[%s4348_s26 + $0x2a0] sm:$0xff]   ;;  %v4091_v37 = vld [vmem:[%s4348_s26 + $0x318] sm:$0xff]  }
  0x40   : > { %3644 = vmatpush3.bf16.msra.mxu0 %v4019_v57  ;;  %v265_v57 = vadd.s32 1024, %v4368_v19 }
  0x41   : > { %3666 = vmatpush3.bf16.msra.mxu1 %v4020_v58  ;;  %3645 = vmatprep.subr.bf16.mxu0 %v4021_v59  ;;  %v4065_v58 = vld [vmem:[%s4348_s26 + $0x268] sm:$0xff]   ;;  %v266_v59 = vadd.s32 1152, %v4368_v19 }
  0x42   : > { %3667 = vmatprep.subr.bf16.mxu1 %v4022_v60  ;;  %v4066_v60 = vld [vmem:[%s4348_s26 + $0x2e8] sm:$0xff]  }
  0x44   : > { %3646 = vmatpush3.bf16.msra.mxu0 %v4023_v61  ;;  %v267_v61 = vadd.s32 1280, %v4368_v19 }
  0x45   : > { %3668 = vmatpush3.bf16.msra.mxu1 %v4024_v62  ;;  %3647 = vmatprep.subr.bf16.mxu0 %v4025_v63  ;;  %v4067_v62 = vld [vmem:[%s4348_s26 + $0x228] sm:$0xff]   ;;  %v268_v63 = vadd.s32 1408, %v4368_v19 }
  0x46   : > { %3669 = vmatprep.subr.bf16.mxu1 %v4026_v0  ;;  %v4068_v0 = vld [vmem:[%s4348_s26 + $0x2a8] sm:$0xff]  }
  0x48   : > { %3648 = vmatpush3.bf16.msra.mxu0 %v4027_v1  ;;  %v298_v1 = vadd.s32 %v4376_v25, %v265_v57 }
  0x49   : > { %3670 = vmatpush3.bf16.msra.mxu1 %v4028_v2  ;;  %3649 = vmatprep.subr.bf16.mxu0 %v4029_v3  ;;  %v4069_v2 = vld [vmem:[%s4348_s26 + $0x270] sm:$0xff]   ;;  %v299_v3 = vadd.s32 %v4376_v25, %v266_v59  ;;  %v4105_v59 = vld [vmem:[%s4348_s26 + $0x378] sm:$0xff]  }
  0x4a   : > { %3671 = vmatprep.subr.bf16.mxu1 %v4030_v4  ;;  %v4070_v4 = vld [vmem:[%s4348_s26 + $0x2f0] sm:$0xff]   ;;  %vm330_vm13 = vcmp.lt.s32.totalorder %v298_v1, 5000 }
  0x4b   : > { %vm331_vm14 = vcmp.lt.s32.totalorder %v299_v3, 5000 }
  0x4c   : > { %3650 = vmatpush3.bf16.msra.mxu0 %v4031_v5  ;;  %v300_v5 = vadd.s32 %v4376_v25, %v267_v61  ;;  %vm358_vm1 = vmpackc.low %vm331_vm14, %vm330_vm13  ;;  %v4107_v61 = vld [vmem:[%s4348_s26 + $0x338] sm:$0xff]  }
  0x4d   : > { %3672 = vmatpush3.bf16.msra.mxu1 %v4032_v7  ;;  %3651 = vmatprep.subr.bf16.mxu0 %v4033_v9  ;;  %v301_v7 = vadd.s32 %v4376_v25, %v268_v63  ;;  %v4073_v9 = vld [vmem:[%s4348_s26 + $0x278] sm:$0xff]   ;;  %v245_v63 = vld [vmem:[%s4343_s22 + $0x30] sm:$0xff] }
  0x4e   : > { %3673 = vmatprep.subr.bf16.mxu1 %v4034_v11  ;;  %vm332_vm15 = vcmp.lt.s32.totalorder %v300_v5, 5000  ;;  %v4075_v11 = vld [vmem:[%s4348_s26 + $0x238] sm:$0xff]   ;;  %v4109_v5 = vld [vmem:[%s4348_s26 + $0x440] sm:$0xff]  }
  0x4f   : > { %vm333_vm0 = vcmp.lt.s32.totalorder %v301_v7, 5000 }
  0x50   : > { %3652 = vmatpush3.bf16.msra.mxu0 %v4035_v13  ;;  %v243_v13 = vld [vmem:[%s4343_s22 + $0x20] sm:$0xff]  ;;  %vm359_vm2 = vmpackc.low %vm333_vm0, %vm332_vm15 }
  0x51   : > { %3674 = vmatpush3.bf16.msra.mxu1 %v4036_v15  ;;  %3653 = vmatprep.subr.bf16.mxu0 %v4037_v17  ;;  %v374_v15 = vsel %vm358_vm1, %v243_v13, 0  ;;  %v4115_v13 = vld [vmem:[%s4348_s26 + $0x408] sm:$0xff]  }
  0x52   : > { %3675 = vmatprep.subr.bf16.mxu1 %v4038_v20  ;;  %v3311_v17 = vcombine.low %v374_v15, %v374_v15  ;;  %v3312_v18 = vcombine.high %v374_v15, %v374_v15  ;;  %v375_v20 = vsel %vm359_vm2, %v244_v14, 0  ;;  %v4116_v14 = vld [vmem:[%s4348_s26 + $0x488] sm:$0xff]   ;;  %v4117_v15 = vld [vmem:[%s4348_s26 + $0x450] sm:$0xff]  }
  0x54   : > { %3654 = vmatpush3.bf16.msra.mxu0 %v4039_v22  ;;  %v3313_v22 = vcombine.low %v375_v20, %v375_v20 }
  0x55   : > { %3676 = vmatpush3.bf16.msra.mxu1 %v4040_v23  ;;  %3655 = vmatprep.subr.bf16.mxu0 %v4041_v24  ;;  %v3314_v23 = vcombine.high %v375_v20, %v375_v20  ;;  %v4079_v24 = vld [vmem:[%s4348_s26 + $0x300] sm:$0xff]   ;;  %v4121_v20 = vld [vmem:[%s4348_s26 + $0x458] sm:$0xff]  }
  0x56   : > { %3677 = vmatprep.subr.bf16.mxu1 %v4042_v26  ;;  %v4080_v26 = vld [vmem:[%s4348_s26 + $0x380] sm:$0xff]  }
  0x58   : > { %3656 = vmatpush3.bf16.msra.mxu0 %v4043_v27  ;;  %v4081_v27 = vld [vmem:[%s4348_s26 + $0x348] sm:$0xff]  }
  0x59   : > { %3678 = vmatpush3.bf16.msra.mxu1 %v4044_v28  ;;  %3685 = vmatprep.subr.bf16.mxu0 %v4045_v35  ;;  %v4082_v28 = vld [vmem:[%s4348_s26 + $0x3c8] sm:$0xff]   ;;  %v4089_v35 = vld [vmem:[%s4348_s26 + $0x358] sm:$0xff]  }
  0x5a   : > { %3707 = vmatprep.subr.bf16.mxu1 %v4046_v38  ;;  %v4092_v38 = vld [vmem:[%s4348_s26 + $0x398] sm:$0xff]  }
  0x5b   : > { %2660 = vmatmul.mubr.bf16.vlgmr.msra.gmra.mrb[4].mxu0 %v3307_v32  ;;  %v4086_v32 = vld [vmem:[%s4348_s26 + $0x3d0] sm:$0xff]  }
  0x5c   : > { %2700 = vmatmul.mubr.bf16.vlgmr.msra.gmra.mrb[4].mxu1 %v3309_v36  ;;  %3686 = vmatpush3.bf16.msra.mxu0 %v4047_v39  ;;  %v4090_v36 = vld [vmem:[%s4348_s26 + $0x3d8] sm:$0xff]   ;;  %v4093_v39 = vld [vmem:[%s4348_s26 + $0x360] sm:$0xff]  }
  0x5d   : > { %3708 = vmatpush3.bf16.msra.mxu1 %v4048_v40  ;;  %3687 = vmatprep.subr.bf16.mxu0 %v4049_v41  ;;  %v4094_v40 = vld [vmem:[%s4348_s26 + $0x3e0] sm:$0xff]  }
  0x5e   : > { %3709 = vmatprep.subr.bf16.mxu1 %v4050_v42  ;;  %2739 = vmatprep.mubr.bf16.mxu0 %v3312_v18  ;;  %v4095_v41 = vld [vmem:[%s4348_s26 + $0x320] sm:$0xff]   ;;  %v4120_v18 = vld [vmem:[%s4348_s26 + $0x490] sm:$0xff]  }
  0x5f   : > { %2779 = vmatprep.mubr.bf16.mxu1 %v3314_v23  ;;  %v4096_v42 = vld [vmem:[%s4348_s26 + $0x3a0] sm:$0xff]   ;;  %v4124_v23 = vld [vmem:[%s4348_s26 + $0x498] sm:$0xff]  }
  0x60   : > { %3688 = vmatpush3.bf16.msra.mxu0 %v4051_v43  ;;  %v269_v43 = vadd.s32 1536, %v4368_v19 }
  0x61   : > { %3710 = vmatpush3.bf16.msra.mxu1 %v4052_v44  ;;  %3689 = vmatprep.subr.bf16.mxu0 %v4053_v45  ;;  %v4097_v44 = vld [vmem:[%s4348_s26 + $0x368] sm:$0xff]   ;;  %v270_v45 = vadd.s32 1664, %v4368_v19 }
  0x62   : > { %3711 = vmatprep.subr.bf16.mxu1 %v4054_v46  ;;  %v4098_v46 = vld [vmem:[%s4348_s26 + $0x3e8] sm:$0xff]  }
  0x64   : > { %3690 = vmatpush3.bf16.msra.mxu0 %v4055_v47  ;;  %v271_v47 = vadd.s32 1792, %v4368_v19 }
  0x65   : > { %3712 = vmatpush3.bf16.msra.mxu1 %v4056_v48  ;;  %3691 = vmatprep.subr.bf16.mxu0 %v4057_v49  ;;  %v4099_v48 = vld [vmem:[%s4348_s26 + $0x328] sm:$0xff]   ;;  %v272_v49 = vadd.s32 1920, %v4368_v19 }
  0x66   : > { %3713 = vmatprep.subr.bf16.mxu1 %v4058_v50  ;;  %v4100_v50 = vld [vmem:[%s4348_s26 + $0x3a8] sm:$0xff]  }
  0x67   : > { %v305_v57 = vadd.s32 %v4376_v25, %v272_v49  ;;  %v247_v49 = vld [vmem:[%s4343_s22 + $0x40] sm:$0xff] }
  0x68   : > { %3692 = vmatpush3.bf16.msra.mxu0 %v4059_v51  ;;  %v302_v51 = vadd.s32 %v4376_v25, %v269_v43  ;;  %v4135_v43 = vld [vmem:[%s4348_s26 + $0x430] sm:$0xff]  }
  0x69   : > { %3714 = vmatpush3.bf16.msra.mxu1 %v4060_v52  ;;  %3693 = vmatprep.subr.bf16.mxu0 %v4061_v53  ;;  %v4101_v52 = vld [vmem:[%s4348_s26 + $0x370] sm:$0xff]   ;;  %v303_v53 = vadd.s32 %v4376_v25, %v270_v45  ;;  %vm337_vm6 = vcmp.lt.s32.totalorder %v305_v57, 5000  ;;  %v4137_v45 = vld [vmem:[%s4348_s26 + $0x478] sm:$0xff]  }
  0x6a   : > { %3715 = vmatprep.subr.bf16.mxu1 %v4062_v54  ;;  %v4102_v54 = vld [vmem:[%s4348_s26 + $0x3f0] sm:$0xff]   ;;  %vm334_vm3 = vcmp.lt.s32.totalorder %v302_v51, 5000  ;;  %v248_v51 = vld [vmem:[%s4343_s22 + $0x48] sm:$0xff] }
  0x6b   : > { %vm335_vm4 = vcmp.lt.s32.totalorder %v303_v53, 5000 }
  0x6c   : > { %3694 = vmatpush3.bf16.msra.mxu0 %v4063_v55  ;;  %v304_v55 = vadd.s32 %v4376_v25, %v271_v47  ;;  %vm360_vm7 = vmpackc.low %vm335_vm4, %vm334_vm3  ;;  %v4139_v47 = vld [vmem:[%s4348_s26 + $0x438] sm:$0xff]  }
  0x6d   : > { %3716 = vmatpush3.bf16.msra.mxu1 %v4064_v56  ;;  %3695 = vmatprep.subr.bf16.mxu0 %v4065_v58  ;;  %v4103_v56 = vld [vmem:[%s4348_s26 + $0x330] sm:$0xff]   ;;  %v376_v1 = vsel %vm360_vm7, %v245_v63, 0  ;;  %v4147_v63 = vld [vmem:[%s4348_s26 + $0x508] sm:$0xff]  }
  0x6e   : > { %3717 = vmatprep.subr.bf16.mxu1 %v4066_v60  ;;  %v4104_v58 = vld [vmem:[%s4348_s26 + $0x3b0] sm:$0xff]   ;;  %v4106_v60 = vld [vmem:[%s4348_s26 + $0x3f8] sm:$0xff]   ;;  %vm336_vm5 = vcmp.lt.s32.totalorder %v304_v55, 5000  ;;  %v3316_v3 = vcombine.high %v376_v1, %v376_v1  ;;  %v4141_v55 = vld [vmem:[%s4348_s26 + $0x540] sm:$0xff]  }
  0x6f   : > { %vm361_vm8 = vmpackc.low %vm337_vm6, %vm336_vm5 }
  0x70   : > { %3696 = vmatpush3.bf16.msra.mxu0 %v4067_v62  ;;  %v4108_v62 = vld [vmem:[%s4348_s26 + $0x3b8] sm:$0xff]  }
  0x71   : > { %3718 = vmatpush3.bf16.msra.mxu1 %v4068_v0  ;;  %3697 = vmatprep.subr.bf16.mxu0 %v4069_v2  ;;  %v246_v0 = vld [vmem:[%s4343_s22 + $0x38] sm:$0xff]  ;;  %v3315_v2 = vcombine.low %v376_v1, %v376_v1  ;;  %v4149_v1 = vld [vmem:[%s4348_s26 + $0x550] sm:$0xff]  }
  0x72   : > { %3719 = vmatprep.subr.bf16.mxu1 %v4070_v4  ;;  %v377_v4 = vsel %vm361_vm8, %v246_v0, 0  ;;  %v4148_v0 = vld [vmem:[%s4348_s26 + $0x588] sm:$0xff]  }
  0x73   : > { %v3318_v7 = vcombine.high %v377_v4, %v377_v4 }
  0x74   : > { %3698 = vmatpush3.bf16.msra.mxu0 %v4071_v6  ;;  %v3317_v6 = vcombine.low %v377_v4, %v377_v4  ;;  %v4152_v4 = vld [vmem:[%s4348_s26 + $0x590] sm:$0xff]  }
  0x75   : > { %3720 = vmatpush3.bf16.msra.mxu1 %v4072_v8  ;;  %3699 = vmatprep.subr.bf16.mxu0 %v4073_v9  ;;  %v4110_v8 = vld [vmem:[%s4348_s26 + $0x4c0] sm:$0xff]  }
  0x76   : > { %3721 = vmatprep.subr.bf16.mxu1 %v4074_v10  ;;  %v4111_v9 = vld [vmem:[%s4348_s26 + $0x400] sm:$0xff]  }
  0x77   : > { %v4112_v10 = vld [vmem:[%s4348_s26 + $0x480] sm:$0xff]  }
  0x78   : > { %3700 = vmatpush3.bf16.msra.mxu0 %v4075_v11  ;;  %v4113_v11 = vld [vmem:[%s4348_s26 + $0x448] sm:$0xff]  }
  0x79   : > { %3722 = vmatpush3.bf16.msra.mxu1 %v4076_v12  ;;  %3729 = vmatprep.subr.bf16.mxu0 %v4077_v16  ;;  %v4114_v12 = vld [vmem:[%s4348_s26 + $0x4c8] sm:$0xff]   ;;  %v4118_v16 = vld [vmem:[%s4348_s26 + $0x4d0] sm:$0xff]  }
  0x7a   : > { %3751 = vmatprep.subr.bf16.mxu1 %v4078_v21  ;;  %v4122_v21 = vld [vmem:[%s4348_s26 + $0x4d8] sm:$0xff]  }
  0x7b   : > { %2740 = vmatmul.mubr.bf16.vlgmr.msra.gmra.mrb[8].mxu0 %v3311_v17  ;;  %v4119_v17 = vld [vmem:[%s4348_s26 + $0x410] sm:$0xff]  }
  0x7c   : > { %2780 = vmatmul.mubr.bf16.vlgmr.msra.gmra.mrb[8].mxu1 %v3313_v22  ;;  %3730 = vmatpush3.bf16.msra.mxu0 %v4079_v24  ;;  %v4123_v22 = vld [vmem:[%s4348_s26 + $0x418] sm:$0xff]   ;;  %v4125_v24 = vld [vmem:[%s4348_s26 + $0x460] sm:$0xff]  }
  0x7d   : > { %3752 = vmatpush3.bf16.msra.mxu1 %v4080_v26  ;;  %3731 = vmatprep.subr.bf16.mxu0 %v4081_v27  ;;  %v4126_v26 = vld [vmem:[%s4348_s26 + $0x4e0] sm:$0xff]  }
  0x7e   : > { %3753 = vmatprep.subr.bf16.mxu1 %v4082_v28  ;;  %2819 = vmatprep.mubr.bf16.mxu0 %v3316_v3  ;;  %v4127_v27 = vld [vmem:[%s4348_s26 + $0x420] sm:$0xff]   ;;  %v273_v28 = vadd.s32 2048, %v4368_v19  ;;  %v4151_v3 = vld [vmem:[%s4348_s26 + $0x510] sm:$0xff]  }
  0x7f   : > { %2859 = vmatprep.mubr.bf16.mxu1 %v3318_v7  ;;  %v4155_v7 = vld [vmem:[%s4348_s26 + $0x518] sm:$0xff]  }
  0x80   : > { %3732 = vmatpush3.bf16.msra.mxu0 %v4083_v29  ;;  %v4128_v29 = vld [vmem:[%s4348_s26 + $0x4a0] sm:$0xff]  }
  0x81   : > { %3754 = vmatpush3.bf16.msra.mxu1 %v4084_v30  ;;  %3733 = vmatprep.subr.bf16.mxu0 %v4085_v31  ;;  %v274_v30 = vadd.s32 2176, %v4368_v19  ;;  %v4129_v31 = vld [vmem:[%s4348_s26 + $0x468] sm:$0xff]  }
  0x82   : > { %3755 = vmatprep.subr.bf16.mxu1 %v4086_v32  ;;  %v275_v32 = vadd.s32 2304, %v4368_v19 }
  0x84   : > { %3734 = vmatpush3.bf16.msra.mxu0 %v4087_v33  ;;  %v4130_v33 = vld [vmem:[%s4348_s26 + $0x4e8] sm:$0xff]  }
  0x85   : > { %3756 = vmatpush3.bf16.msra.mxu1 %v4088_v34  ;;  %3735 = vmatprep.subr.bf16.mxu0 %v4089_v35  ;;  %v276_v34 = vadd.s32 2432, %v4368_v19  ;;  %v4131_v35 = vld [vmem:[%s4348_s26 + $0x428] sm:$0xff]  }
  0x86   : > { %3757 = vmatprep.subr.bf16.mxu1 %v4090_v36  ;;  %v306_v36 = vadd.s32 %v4376_v25, %v273_v28  ;;  %v4167_v28 = vld [vmem:[%s4348_s26 + $0x530] sm:$0xff]  }
  0x88   : > { %3736 = vmatpush3.bf16.msra.mxu0 %v4091_v37  ;;  %v4132_v37 = vld [vmem:[%s4348_s26 + $0x4a8] sm:$0xff]   ;;  %vm338_vm9 = vcmp.lt.s32.totalorder %v306_v36, 5000  ;;  %v250_v36 = vld [vmem:[%s4343_s22 + $0x58] sm:$0xff] }
  0x89   : > { %3758 = vmatpush3.bf16.msra.mxu1 %v4092_v38  ;;  %3737 = vmatprep.subr.bf16.mxu0 %v4093_v39  ;;  %v307_v38 = vadd.s32 %v4376_v25, %v274_v30  ;;  %v4133_v39 = vld [vmem:[%s4348_s26 + $0x470] sm:$0xff]  }
  0x8a   : > { %3759 = vmatprep.subr.bf16.mxu1 %v4094_v40  ;;  %v308_v40 = vadd.s32 %v4376_v25, %v275_v32  ;;  %v4168_v30 = vld [vmem:[%s4348_s26 + $0x5b0] sm:$0xff]   ;;  %v4170_v32 = vld [vmem:[%s4348_s26 + $0x5f8] sm:$0xff]  }
  0x8b   : > { %vm339_vm10 = vcmp.lt.s32.totalorder %v307_v38, 5000  ;;  %v4173_v38 = vld [vmem:[%s4348_s26 + $0x640] sm:$0xff]  }
  0x8c   : > { %3738 = vmatpush3.bf16.msra.mxu0 %v4095_v41  ;;  %v4134_v41 = vld [vmem:[%s4348_s26 + $0x4f0] sm:$0xff]   ;;  %vm340_vm11 = vcmp.lt.s32.totalorder %v308_v40, 5000  ;;  %vm362_vm13 = vmpackc.low %vm339_vm10, %vm338_vm9 }
  0x8d   : > { %3760 = vmatpush3.bf16.msra.mxu1 %v4096_v42  ;;  %3739 = vmatprep.subr.bf16.mxu0 %v4097_v44  ;;  %v309_v42 = vadd.s32 %v4376_v25, %v276_v34  ;;  %v4136_v44 = vld [vmem:[%s4348_s26 + $0x4b0] sm:$0xff]   ;;  %v4172_v34 = vld [vmem:[%s4348_s26 + $0x5b8] sm:$0xff]  }
  0x8e   : > { %3761 = vmatprep.subr.bf16.mxu1 %v4098_v46  ;;  %v4138_v46 = vld [vmem:[%s4348_s26 + $0x4f8] sm:$0xff]  }
  0x8f   : > { %vm341_vm12 = vcmp.lt.s32.totalorder %v309_v42, 5000  ;;  %v4174_v42 = vld [vmem:[%s4348_s26 + $0x6c0] sm:$0xff]  }
  0x90   : > { %3740 = vmatpush3.bf16.msra.mxu0 %v4099_v48  ;;  %v4140_v48 = vld [vmem:[%s4348_s26 + $0x4b8] sm:$0xff]   ;;  %vm363_vm14 = vmpackc.low %vm341_vm12, %vm340_vm11 }
  0x91   : > { %3762 = vmatpush3.bf16.msra.mxu1 %v4100_v50  ;;  %3741 = vmatprep.subr.bf16.mxu0 %v4101_v52  ;;  %v378_v50 = vsel %vm362_vm13, %v247_v49, 0  ;;  %v4179_v49 = vld [vmem:[%s4348_s26 + $0x608] sm:$0xff]  }
  0x92   : > { %3763 = vmatprep.subr.bf16.mxu1 %v4102_v54  ;;  %v3319_v52 = vcombine.low %v378_v50, %v378_v50  ;;  %v3320_v53 = vcombine.high %v378_v50, %v378_v50  ;;  %v379_v54 = vsel %vm363_vm14, %v248_v51, 0  ;;  %v4180_v50 = vld [vmem:[%s4348_s26 + $0x688] sm:$0xff]   ;;  %v4181_v51 = vld [vmem:[%s4348_s26 + $0x650] sm:$0xff]  }
  0x93   : > { %v3322_v57 = vcombine.high %v379_v54, %v379_v54 }
  0x94   : > { %3742 = vmatpush3.bf16.msra.mxu0 %v4103_v56  ;;  %v3321_v56 = vcombine.low %v379_v54, %v379_v54  ;;  %v4184_v54 = vld [vmem:[%s4348_s26 + $0x690] sm:$0xff]  }
  0x95   : > { %3764 = vmatpush3.bf16.msra.mxu1 %v4104_v58  ;;  %3743 = vmatprep.subr.bf16.mxu0 %v4105_v59  ;;  %v4142_v58 = vld [vmem:[%s4348_s26 + $0x5c0] sm:$0xff]  }
  0x96   : > { %3765 = vmatprep.subr.bf16.mxu1 %v4106_v60  ;;  %v4143_v59 = vld [vmem:[%s4348_s26 + $0x500] sm:$0xff]  }
  0x97   : > { %v4144_v60 = vld [vmem:[%s4348_s26 + $0x580] sm:$0xff]  }
  0x98   : > { %3744 = vmatpush3.bf16.msra.mxu0 %v4107_v61  ;;  %v4145_v61 = vld [vmem:[%s4348_s26 + $0x548] sm:$0xff]  }
  0x99   : > { %3766 = vmatpush3.bf16.msra.mxu1 %v4108_v62  ;;  %3773 = vmatprep.subr.bf16.mxu0 %v4109_v5  ;;  %v4146_v62 = vld [vmem:[%s4348_s26 + $0x5c8] sm:$0xff]   ;;  %v4153_v5 = vld [vmem:[%s4348_s26 + $0x558] sm:$0xff]  }
  0x9a   : > { %3795 = vmatprep.subr.bf16.mxu1 %v4110_v8  ;;  %v4156_v8 = vld [vmem:[%s4348_s26 + $0x598] sm:$0xff]  }
  0x9b   : > { %2820 = vmatmul.mubr.bf16.vlgmr.msra.gmra.mrb[12].mxu0 %v3315_v2  ;;  %v4150_v2 = vld [vmem:[%s4348_s26 + $0x5d0] sm:$0xff]  }
  0x9c   : > { %2860 = vmatmul.mubr.bf16.vlgmr.msra.gmra.mrb[12].mxu1 %v3317_v6  ;;  %3774 = vmatpush3.bf16.msra.mxu0 %v4111_v9  ;;  %v4154_v6 = vld [vmem:[%s4348_s26 + $0x5d8] sm:$0xff]   ;;  %v4157_v9 = vld [vmem:[%s4348_s26 + $0x560] sm:$0xff]  }
  0x9d   : > { %3796 = vmatpush3.bf16.msra.mxu1 %v4112_v10  ;;  %3775 = vmatprep.subr.bf16.mxu0 %v4113_v11  ;;  %v4158_v10 = vld [vmem:[%s4348_s26 + $0x5e0] sm:$0xff]  }
  0x9e   : > { %3797 = vmatprep.subr.bf16.mxu1 %v4114_v12  ;;  %2899 = vmatprep.mubr.bf16.mxu0 %v3320_v53  ;;  %v4159_v11 = vld [vmem:[%s4348_s26 + $0x520] sm:$0xff]   ;;  %v4183_v53 = vld [vmem:[%s4348_s26 + $0x610] sm:$0xff]  }
  0x9f   : > { %2939 = vmatprep.mubr.bf16.mxu1 %v3322_v57  ;;  %v4160_v12 = vld [vmem:[%s4348_s26 + $0x5a0] sm:$0xff]   ;;  %v4187_v57 = vld [vmem:[%s4348_s26 + $0x618] sm:$0xff]  }
  0xa0   : > { %3776 = vmatpush3.bf16.msra.mxu0 %v4115_v13  ;;  %v277_v13 = vadd.s32 2560, %v4368_v19 }
  0xa1   : > { %3798 = vmatpush3.bf16.msra.mxu1 %v4116_v14  ;;  %3777 = vmatprep.subr.bf16.mxu0 %v4117_v15  ;;  %v4161_v14 = vld [vmem:[%s4348_s26 + $0x568] sm:$0xff]   ;;  %v278_v15 = vadd.s32 2688, %v4368_v19 }
  0xa2   : > { %3799 = vmatprep.subr.bf16.mxu1 %v4118_v16  ;;  %v4162_v16 = vld [vmem:[%s4348_s26 + $0x5e8] sm:$0xff]  }
  0xa4   : > { %3778 = vmatpush3.bf16.msra.mxu0 %v4119_v17  ;;  %v279_v17 = vadd.s32 2816, %v4368_v19 }
  0xa5   : > { %3800 = vmatpush3.bf16.msra.mxu1 %v4120_v18  ;;  %3779 = vmatprep.subr.bf16.mxu0 %v4121_v20  ;;  %v4163_v18 = vld [vmem:[%s4348_s26 + $0x528] sm:$0xff]   ;;  %v280_v20 = vadd.s32 2944, %v4368_v19 }
  0xa6   : > { %3801 = vmatprep.subr.bf16.mxu1 %v4122_v21  ;;  %v4164_v21 = vld [vmem:[%s4348_s26 + $0x5a8] sm:$0xff]  }
  0xa8   : > { %3780 = vmatpush3.bf16.msra.mxu0 %v4123_v22  ;;  %v310_v22 = vadd.s32 %v4376_v25, %v277_v13 }
  0xa9   : > { %3802 = vmatpush3.bf16.msra.mxu1 %v4124_v23  ;;  %3781 = vmatprep.subr.bf16.mxu0 %v4125_v24  ;;  %v4165_v23 = vld [vmem:[%s4348_s26 + $0x570] sm:$0xff]   ;;  %v311_v24 = vadd.s32 %v4376_v25, %v278_v15  ;;  %v4201_v15 = vld [vmem:[%s4348_s26 + $0x678] sm:$0xff]  }
  0xaa   : > { %3803 = vmatprep.subr.bf16.mxu1 %v4126_v26  ;;  %v4166_v26 = vld [vmem:[%s4348_s26 + $0x5f0] sm:$0xff]   ;;  %vm342_vm15 = vcmp.lt.s32.totalorder %v310_v22, 5000 }
  0xab   : > { %vm343_vm0 = vcmp.lt.s32.totalorder %v311_v24, 5000 }
  0xac   : > { %3782 = vmatpush3.bf16.msra.mxu0 %v4127_v27  ;;  %v312_v27 = vadd.s32 %v4376_v25, %v279_v17  ;;  %vm364_vm3 = vmpackc.low %vm343_vm0, %vm342_vm15  ;;  %v4203_v17 = vld [vmem:[%s4348_s26 + $0x638] sm:$0xff]  }
  0xad   : > { %3804 = vmatpush3.bf16.msra.mxu1 %v4128_v29  ;;  %3783 = vmatprep.subr.bf16.mxu0 %v4129_v31  ;;  %v313_v29 = vadd.s32 %v4376_v25, %v280_v20  ;;  %v4169_v31 = vld [vmem:[%s4348_s26 + $0x578] sm:$0xff]   ;;  %v251_v20 = vld [vmem:[%s4343_s22 + $0x60] sm:$0xff] }
  0xae   : > { %3805 = vmatprep.subr.bf16.mxu1 %v4130_v33  ;;  %vm344_vm1 = vcmp.lt.s32.totalorder %v312_v27, 5000  ;;  %v4171_v33 = vld [vmem:[%s4348_s26 + $0x538] sm:$0xff]   ;;  %v4205_v27 = vld [vmem:[%s4348_s26 + $0x740] sm:$0xff]  }
  0xaf   : > { %vm345_vm2 = vcmp.lt.s32.totalorder %v313_v29, 5000 }
  0xb0   : > { %3784 = vmatpush3.bf16.msra.mxu0 %v4131_v35  ;;  %v249_v35 = vld [vmem:[%s4343_s22 + $0x50] sm:$0xff]  ;;  %vm365_vm4 = vmpackc.low %vm345_vm2, %vm344_vm1  ;;  %vm3188_vm1 = vcmask 64512  }
  0xb1   : > { %3806 = vmatpush3.bf16.msra.mxu1 %v4132_v37  ;;  %3785 = vmatprep.subr.bf16.mxu0 %v4133_v39  ;;  %v380_v37 = vsel %vm364_vm3, %v249_v35, 0  ;;  %v4211_v35 = vld [vmem:[%s4348_s26 + $0x708] sm:$0xff]  }
  0xb2   : > { %3807 = vmatprep.subr.bf16.mxu1 %v4134_v41  ;;  %v3323_v39 = vcombine.low %v380_v37, %v380_v37  ;;  %v3324_v40 = vcombine.high %v380_v37, %v380_v37  ;;  %v381_v41 = vsel %vm365_vm4, %v250_v36, 0  ;;  %v4212_v36 = vld [vmem:[%s4348_s26 + $0x788] sm:$0xff]   ;;  %v4213_v37 = vld [vmem:[%s4348_s26 + $0x750] sm:$0xff]  }
  0xb4   : > { %3786 = vmatpush3.bf16.msra.mxu0 %v4135_v43  ;;  %v3325_v43 = vcombine.low %v381_v41, %v381_v41 }
  0xb5   : > { %3808 = vmatpush3.bf16.msra.mxu1 %v4136_v44  ;;  %3787 = vmatprep.subr.bf16.mxu0 %v4137_v45  ;;  %v3326_v44 = vcombine.high %v381_v41, %v381_v41  ;;  %v4175_v45 = vld [vmem:[%s4348_s26 + $0x600] sm:$0xff]   ;;  %v4216_v41 = vld [vmem:[%s4348_s26 + $0x790] sm:$0xff]  }
  0xb6   : > { %3809 = vmatprep.subr.bf16.mxu1 %v4138_v46  ;;  %v4176_v46 = vld [vmem:[%s4348_s26 + $0x680] sm:$0xff]  }
  0xb8   : > { %3788 = vmatpush3.bf16.msra.mxu0 %v4139_v47  ;;  %v4177_v47 = vld [vmem:[%s4348_s26 + $0x648] sm:$0xff]  }
  0xb9   : > { %3810 = vmatpush3.bf16.msra.mxu1 %v4140_v48  ;;  %3817 = vmatprep.subr.bf16.mxu0 %v4141_v55  ;;  %v4178_v48 = vld [vmem:[%s4348_s26 + $0x6c8] sm:$0xff]   ;;  %v4185_v55 = vld [vmem:[%s4348_s26 + $0x658] sm:$0xff]  }
  0xba   : > { %3839 = vmatprep.subr.bf16.mxu1 %v4142_v58  ;;  %v4188_v58 = vld [vmem:[%s4348_s26 + $0x698] sm:$0xff]  }
  0xbb   : > { %2900 = vmatmul.mubr.bf16.vlgmr.msra.gmra.mrb[16].mxu0 %v3319_v52  ;;  %v4182_v52 = vld [vmem:[%s4348_s26 + $0x6d0] sm:$0xff]  }
  0xbc   : > { %2940 = vmatmul.mubr.bf16.vlgmr.msra.gmra.mrb[16].mxu1 %v3321_v56  ;;  %3818 = vmatpush3.bf16.msra.mxu0 %v4143_v59  ;;  %v4186_v56 = vld [vmem:[%s4348_s26 + $0x6d8] sm:$0xff]   ;;  %v4189_v59 = vld [vmem:[%s4348_s26 + $0x660] sm:$0xff]  }
  0xbd   : > { %3840 = vmatpush3.bf16.msra.mxu1 %v4144_v60  ;;  %3819 = vmatprep.subr.bf16.mxu0 %v4145_v61  ;;  %v4190_v60 = vld [vmem:[%s4348_s26 + $0x6e0] sm:$0xff]  }
  0xbe   : > { %3841 = vmatprep.subr.bf16.mxu1 %v4146_v62  ;;  %2979 = vmatprep.mubr.bf16.mxu0 %v3324_v40  ;;  %v4191_v61 = vld [vmem:[%s4348_s26 + $0x620] sm:$0xff]   ;;  %v285_v40 = vadd.s32 3584, %v4368_v19 }
  0xbf   : > { %3019 = vmatprep.mubr.bf16.mxu1 %v3326_v44  ;;  %v4192_v62 = vld [vmem:[%s4348_s26 + $0x6a0] sm:$0xff]   ;;  %v287_v44 = vadd.s32 3840, %v4368_v19 }
  0xc0   : > { %3820 = vmatpush3.bf16.msra.mxu0 %v4147_v63  ;;  %v281_v63 = vadd.s32 3072, %v4368_v19 }
  0xc1   : > { %3842 = vmatpush3.bf16.msra.mxu1 %v4148_v0  ;;  %3821 = vmatprep.subr.bf16.mxu0 %v4149_v1  ;;  %v4193_v0 = vld [vmem:[%s4348_s26 + $0x668] sm:$0xff]   ;;  %v282_v1 = vadd.s32 3200, %v4368_v19 }
  0xc2   : > { %3843 = vmatprep.subr.bf16.mxu1 %v4150_v2  ;;  %v4194_v2 = vld [vmem:[%s4348_s26 + $0x6e8] sm:$0xff]  }
  0xc4   : > { %3822 = vmatpush3.bf16.msra.mxu0 %v4151_v3  ;;  %v283_v3 = vadd.s32 3328, %v4368_v19 }
  0xc5   : > { %3844 = vmatpush3.bf16.msra.mxu1 %v4152_v4  ;;  %3823 = vmatprep.subr.bf16.mxu0 %v4153_v5  ;;  %v4195_v4 = vld [vmem:[%s4348_s26 + $0x628] sm:$0xff]   ;;  %v284_v5 = vadd.s32 3456, %v4368_v19 }
  0xc6   : > { %3845 = vmatprep.subr.bf16.mxu1 %v4154_v6  ;;  %v4196_v6 = vld [vmem:[%s4348_s26 + $0x6a8] sm:$0xff]  }
  0xc7   : > { %v317_v13 = vadd.s32 %v4376_v25, %v284_v5  ;;  %v4229_v5 = vld [vmem:[%s4348_s26 + $0x770] sm:$0xff]  }
  0xc8   : > { %3824 = vmatpush3.bf16.msra.mxu0 %v4155_v7  ;;  %v314_v7 = vadd.s32 %v4376_v25, %v281_v63  ;;  %v4226_v63 = vld [vmem:[%s4348_s26 + $0x7e8] sm:$0xff]  }
  0xc9   : > { %3846 = vmatpush3.bf16.msra.mxu1 %v4156_v8  ;;  %3825 = vmatprep.subr.bf16.mxu0 %v4157_v9  ;;  %v4197_v8 = vld [vmem:[%s4348_s26 + $0x670] sm:$0xff]   ;;  %v315_v9 = vadd.s32 %v4376_v25, %v282_v1  ;;  %vm349_vm8 = vcmp.lt.s32.totalorder %v317_v13, 5000  ;;  %v4227_v1 = vld [vmem:[%s4348_s26 + $0x728] sm:$0xff]   ;;  %v4235_v13 = vld [vmem:[%s4348_s26 + $0x738] sm:$0xff]  }
  0xca   : > { %3847 = vmatprep.subr.bf16.mxu1 %v4158_v10  ;;  %v4198_v10 = vld [vmem:[%s4348_s26 + $0x6f0] sm:$0xff]   ;;  %vm346_vm5 = vcmp.lt.s32.totalorder %v314_v7, 5000 }
  0xcb   : > { %vm347_vm6 = vcmp.lt.s32.totalorder %v315_v9, 5000  ;;  %v4230_v7 = vld [vmem:[%s4348_s26 + $0x7f0] sm:$0xff]  }
  0xcc   : > { %3826 = vmatpush3.bf16.msra.mxu0 %v4159_v11  ;;  %v316_v11 = vadd.s32 %v4376_v25, %v283_v3  ;;  %vm366_vm9 = vmpackc.low %vm347_vm6, %vm346_vm5  ;;  %v4228_v3 = vld [vmem:[%s4348_s26 + $0x7a8] sm:$0xff]   ;;  %v4231_v9 = vld [vmem:[%s4348_s26 + $0x730] sm:$0xff]  }
  0xcd   : > { %3848 = vmatpush3.bf16.msra.mxu1 %v4160_v12  ;;  %3827 = vmatprep.subr.bf16.mxu0 %v4161_v14  ;;  %v4199_v12 = vld [vmem:[%s4348_s26 + $0x630] sm:$0xff]   ;;  %v382_v22 = vsel %vm366_vm9, %v251_v20, 0 }
  0xce   : > { %3849 = vmatprep.subr.bf16.mxu1 %v4162_v16  ;;  %v4200_v14 = vld [vmem:[%s4348_s26 + $0x6b0] sm:$0xff]   ;;  %v4202_v16 = vld [vmem:[%s4348_s26 + $0x6f8] sm:$0xff]   ;;  %vm348_vm7 = vcmp.lt.s32.totalorder %v316_v11, 5000  ;;  %v3328_v24 = vcombine.high %v382_v22, %v382_v22 }
  0xcf   : > { %vm367_vm10 = vmpackc.low %vm349_vm8, %vm348_vm7  ;;  %v4233_v11 = vld [vmem:[%s4348_s26 + $0x778] sm:$0xff]  }
  0xd0   : > { %3828 = vmatpush3.bf16.msra.mxu0 %v4163_v18  ;;  %v4204_v18 = vld [vmem:[%s4348_s26 + $0x6b8] sm:$0xff]  }
  0xd1   : > { %3850 = vmatpush3.bf16.msra.mxu1 %v4164_v21  ;;  %3829 = vmatprep.subr.bf16.mxu0 %v4165_v23  ;;  %v252_v21 = vld [vmem:[%s4343_s22 + $0x68] sm:$0xff]  ;;  %v3327_v23 = vcombine.low %v382_v22, %v382_v22 }
  0xd2   : > { %3851 = vmatprep.subr.bf16.mxu1 %v4166_v26  ;;  %v383_v26 = vsel %vm367_vm10, %v252_v21, 0 }
  0xd3   : > { %v3330_v29 = vcombine.high %v383_v26, %v383_v26 }
  0xd4   : > { %3830 = vmatpush3.bf16.msra.mxu0 %v4167_v28  ;;  %v3329_v28 = vcombine.low %v383_v26, %v383_v26 }
  0xd5   : > { %3852 = vmatpush3.bf16.msra.mxu1 %v4168_v30  ;;  %3831 = vmatprep.subr.bf16.mxu0 %v4169_v31  ;;  %v4206_v30 = vld [vmem:[%s4348_s26 + $0x7c0] sm:$0xff]  }
  0xd6   : > { %3853 = vmatprep.subr.bf16.mxu1 %v4170_v32  ;;  %v4207_v31 = vld [vmem:[%s4348_s26 + $0x700] sm:$0xff]  }
  0xd7   : > { %v4208_v32 = vld [vmem:[%s4348_s26 + $0x780] sm:$0xff]  }
  0xd8   : > { %3832 = vmatpush3.bf16.msra.mxu0 %v4171_v33  ;;  %v4209_v33 = vld [vmem:[%s4348_s26 + $0x748] sm:$0xff]  }
  0xd9   : > { %3854 = vmatpush3.bf16.msra.mxu1 %v4172_v34  ;;  %3861 = vmatprep.subr.bf16.mxu0 %v4173_v38  ;;  %v4210_v34 = vld [vmem:[%s4348_s26 + $0x7c8] sm:$0xff]   ;;  %v4214_v38 = vld [vmem:[%s4348_s26 + $0x7d0] sm:$0xff]  }
  0xda   : > { %3883 = vmatprep.subr.bf16.mxu1 %v4174_v42  ;;  %v286_v42 = vadd.s32 3712, %v4368_v19 }
  0xdb   : > { %2980 = vmatmul.mubr.bf16.vlgmr.msra.gmra.mrb[20].mxu0 %v3323_v39  ;;  %v4215_v39 = vld [vmem:[%s4348_s26 + $0x710] sm:$0xff]  }
  0xdc   : > { %3020 = vmatmul.mubr.bf16.vlgmr.msra.gmra.mrb[20].mxu1 %v3325_v43  ;;  %3862 = vmatpush3.bf16.msra.mxu0 %v4175_v45  ;;  %v4217_v43 = vld [vmem:[%s4348_s26 + $0x758] sm:$0xff]  }
  0xdd   : > { %3884 = vmatpush3.bf16.msra.mxu1 %v4176_v46  ;;  %3863 = vmatprep.subr.bf16.mxu0 %v4177_v47  ;;  %v4218_v45 = vld [vmem:[%s4348_s26 + $0x7d8] sm:$0xff]   ;;  %v288_v46 = vadd.s32 3968, %v4368_v19 }
  0xde   : > { %3885 = vmatprep.subr.bf16.mxu1 %v4178_v48  ;;  %3059 = vmatprep.mubr.bf16.mxu0 %v3328_v24  ;;  %v4219_v47 = vld [vmem:[%s4348_s26 + $0x718] sm:$0xff]  }
  0xdf   : > { %3099 = vmatprep.mubr.bf16.mxu1 %v3330_v29 }
  0xe0   : > { %3864 = vmatpush3.bf16.msra.mxu0 %v4179_v49  ;;  %v4220_v49 = vld [vmem:[%s4348_s26 + $0x798] sm:$0xff]  }
  0xe1   : > { %3886 = vmatpush3.bf16.msra.mxu1 %v4180_v50  ;;  %3865 = vmatprep.subr.bf16.mxu0 %v4181_v51  ;;  %v4221_v51 = vld [vmem:[%s4348_s26 + $0x760] sm:$0xff]  }
  0xe2   : > { %3887 = vmatprep.subr.bf16.mxu1 %v4182_v52 }
  0xe4   : > { %3866 = vmatpush3.bf16.msra.mxu0 %v4183_v53  ;;  %v4222_v53 = vld [vmem:[%s4348_s26 + $0x7e0] sm:$0xff]  }
  0xe5   : > { %3888 = vmatpush3.bf16.msra.mxu1 %v4184_v54  ;;  %3867 = vmatprep.subr.bf16.mxu0 %v4185_v55 }
  0xe6   : > { %3889 = vmatprep.subr.bf16.mxu1 %v4186_v56  ;;  %v4223_v56 = vld [vmem:[%s4348_s26 + $0x720] sm:$0xff]  }
  0xe8   : > { %3868 = vmatpush3.bf16.msra.mxu0 %v4187_v57 }
  0xe9   : > { %3890 = vmatpush3.bf16.msra.mxu1 %v4188_v58  ;;  %3869 = vmatprep.subr.bf16.mxu0 %v4189_v59  ;;  %v4224_v58 = vld [vmem:[%s4348_s26 + $0x7a0] sm:$0xff]  }
  0xea   : > { %3891 = vmatprep.subr.bf16.mxu1 %v4190_v60 }
  0xec   : > { %3870 = vmatpush3.bf16.msra.mxu0 %v4191_v61  ;;  %v4225_v61 = vld [vmem:[%s4348_s26 + $0x768] sm:$0xff]  }
  0xed   : > { %3892 = vmatpush3.bf16.msra.mxu1 %v4192_v62  ;;  %3871 = vmatprep.subr.bf16.mxu0 %v4193_v0 }
  0xee   : > { %3893 = vmatprep.subr.bf16.mxu1 %v4194_v2  ;;  %v318_v2 = vadd.s32 %v4376_v25, %v285_v40 }
  0xf0   : > { %3872 = vmatpush3.bf16.msra.mxu0 %v4195_v4  ;;  %v319_v4 = vadd.s32 %v4376_v25, %v286_v42  ;;  %vm350_vm11 = vcmp.lt.s32.totalorder %v318_v2, 5000 }
  0xf1   : > { %3894 = vmatpush3.bf16.msra.mxu1 %v4196_v6  ;;  %3873 = vmatprep.subr.bf16.mxu0 %v4197_v8  ;;  %v320_v6 = vadd.s32 %v4376_v25, %v287_v44  ;;  %v321_v8 = vadd.s32 %v4376_v25, %v288_v46  ;;  %v253_v25 = vld [vmem:[%s4343_s22 + $0x70] sm:$0xff] }
  0xf2   : > { %3895 = vmatprep.subr.bf16.mxu1 %v4198_v10  ;;  %v4232_v10 = vld [vmem:[%s4348_s26 + $0x7b0] sm:$0xff]   ;;  %vm351_vm12 = vcmp.lt.s32.totalorder %v319_v4, 5000 }
  0xf3   : > { %vm352_vm13 = vcmp.lt.s32.totalorder %v320_v6, 5000  ;;  %vm353_vm14 = vcmp.lt.s32.totalorder %v321_v8, 5000  ;;  %vm368_vm15 = vmpackc.low %vm351_vm12, %vm350_vm11 }
  0xf4   : > { %3874 = vmatpush3.bf16.msra.mxu0 %v4199_v12  ;;  %v4234_v12 = vld [vmem:[%s4348_s26 + $0x7f8] sm:$0xff]   ;;  %vm369_vm0 = vmpackc.low %vm353_vm14, %vm352_vm13 }
  0xf5   : > { %3896 = vmatpush3.bf16.msra.mxu1 %v4200_v14  ;;  %3875 = vmatprep.subr.bf16.mxu0 %v4201_v15  ;;  %v4236_v14 = vld [vmem:[%s4348_s26 + $0x7b8] sm:$0xff]   ;;  %v384_v15 = vsel %vm368_vm15, %v253_v25, 0 }
  0xf6   : > { %3897 = vmatprep.subr.bf16.mxu1 %v4202_v16  ;;  %v254_v16 = vld [vmem:[%s4343_s22 + $0x78] sm:$0xff] }
  0xf7   : > { %v385_v20 = vsel %vm369_vm0, %v254_v16, 0 }
  0xf8   : > { %3876 = vmatpush3.bf16.msra.mxu0 %v4203_v17  ;;  %v3331_v17 = vcombine.low %v384_v15, %v384_v15  ;;  %v3333_v21 = vcombine.low %v385_v20, %v385_v20  ;;  %v3334_v22 = vcombine.high %v385_v20, %v385_v20 }
  0xf9   : > { %3898 = vmatpush3.bf16.msra.mxu1 %v4204_v18  ;;  %3905 = vmatprep.subr.bf16.mxu0 %v4205_v27  ;;  %v3332_v18 = vcombine.high %v384_v15, %v384_v15 }
  0xfa   : > { %3927 = vmatprep.subr.bf16.mxu1 %v4206_v30 }
  0xfb   : > { %3060 = vmatmul.mubr.bf16.vlgmr.msra.gmra.mrb[24].mxu0 %v3327_v23 }
  0xfc   : > { %3100 = vmatmul.mubr.bf16.vlgmr.msra.gmra.mrb[24].mxu1 %v3329_v28  ;;  %3906 = vmatpush3.bf16.msra.mxu0 %v4207_v31 }
  0xfd   : > { %3928 = vmatpush3.bf16.msra.mxu1 %v4208_v32  ;;  %3907 = vmatprep.subr.bf16.mxu0 %v4209_v33 }
  0xfe   : > { %3929 = vmatprep.subr.bf16.mxu1 %v4210_v34  ;;  %3139 = vmatprep.mubr.bf16.mxu0 %v3332_v18 }
  0xff   : > { %3179 = vmatprep.mubr.bf16.mxu1 %v3334_v22 }
 0x100   : > { %3908 = vmatpush3.bf16.msra.mxu0 %v4211_v35 }
 0x101   : > { %3930 = vmatpush3.bf16.msra.mxu1 %v4212_v36  ;;  %3909 = vmatprep.subr.bf16.mxu0 %v4213_v37 }
 0x102   : > { %3931 = vmatprep.subr.bf16.mxu1 %v4214_v38 }
 0x104   : > { %3910 = vmatpush3.bf16.msra.mxu0 %v4215_v39 }
 0x105   : > { %3932 = vmatpush3.bf16.msra.mxu1 %v4216_v41  ;;  %3911 = vmatprep.subr.bf16.mxu0 %v4217_v43 }
 0x106   : > { %3933 = vmatprep.subr.bf16.mxu1 %v4218_v45 }
 0x108   : > { %3912 = vmatpush3.bf16.msra.mxu0 %v4219_v47 }
 0x109   : > { %3934 = vmatpush3.bf16.msra.mxu1 %v4220_v49  ;;  %3913 = vmatprep.subr.bf16.mxu0 %v4221_v51 }
 0x10a   : > { %3935 = vmatprep.subr.bf16.mxu1 %v4222_v53 }
 0x10c   : > { %3914 = vmatpush3.bf16.msra.mxu0 %v4223_v56 }
 0x10d   : > { %3936 = vmatpush3.bf16.msra.mxu1 %v4224_v58  ;;  %3915 = vmatprep.subr.bf16.mxu0 %v4225_v61 }
 0x10e   : > { %v3613_v48 = vpop.f32.mrb[0].mxu0  ;;  %3937 = vmatprep.subr.bf16.mxu1 %v4226_v63 }
 0x10f   : > { %v3635_v50 = vpop.f32.mrb[0].mxu1  ;;  %v3614_v52 = vpop.f32.mrb[1].mxu0 }
 0x110   : > { %v3615_v54 = vadd.f32 %v3614_v52, %v3613_v48  ;;  %v3636_v55 = vpop.f32.mrb[1].mxu1  ;;  %v3616_v57 = vpop.f32.mrb[2].mxu0  ;;  %3916 = vmatpush3.bf16.msra.mxu0 %v4227_v1 }
 0x111   : > { %v3637_v19 = vadd.f32 %v3636_v55, %v3635_v50  ;;  %v3638_v59 = vpop.f32.mrb[2].mxu1  ;;  %v3617_v62 = vpop.f32.mrb[3].mxu0  ;;  %3938 = vmatpush3.bf16.msra.mxu1 %v4228_v3  ;;  %3917 = vmatprep.subr.bf16.mxu0 %v4229_v5 }
 0x112   : > { %v3639_v0 = vpop.f32.mrb[3].mxu1  ;;  %3939 = vmatprep.subr.bf16.mxu1 %v4230_v7 }
 0x113   : > { %v2622_v60 = vadd.f32 %v3637_v19, %v3615_v54 }
 0x114   : > { %3918 = vmatpush3.bf16.msra.mxu0 %v4231_v9 }
 0x115   : > { %3940 = vmatpush3.bf16.msra.mxu1 %v4232_v10  ;;  %3919 = vmatprep.subr.bf16.mxu0 %v4233_v11 }
 0x116   : > { %3941 = vmatprep.subr.bf16.mxu1 %v4234_v12 }
 0x118   : > { %3920 = vmatpush3.bf16.msra.mxu0 %v4235_v13 }
 0x119   : > { %3942 = vmatpush3.bf16.msra.mxu1 %v4236_v14 }
 0x11b   : > { %3140 = vmatmul.mubr.bf16.vlgmr.msra.gmra.mrb[28].mxu0 %v3331_v17 }
 0x11c   : > { %3180 = vmatmul.mubr.bf16.vlgmr.msra.gmra.mrb[28].mxu1 %v3333_v21 }
 0x12e   : > { %v3657_v23 = vpop.f32.mrb[4].mxu0 }
 0x12f   : > { %v3679_v24 = vpop.f32.mrb[4].mxu1  ;;  %v3658_v26 = vpop.f32.mrb[5].mxu0 }
 0x130   : > { %v3659_v27 = vadd.f32 %v3658_v26, %v3657_v23  ;;  %v3680_v28 = vpop.f32.mrb[5].mxu1  ;;  %v3660_v29 = vpop.f32.mrb[6].mxu0 }
 0x131   : > { %v3681_v30 = vadd.f32 %v3680_v28, %v3679_v24  ;;  %v3682_v31 = vpop.f32.mrb[6].mxu1  ;;  %v3661_v32 = vpop.f32.mrb[7].mxu0 }
 0x132   : > { %v2662_v33 = vadd.f32 %v3659_v27, %v2622_v60  ;;  %v3683_v34 = vpop.f32.mrb[7].mxu1 }
 0x134   : > { %v2702_v35 = vadd.f32 %v3681_v30, %v2662_v33 }
 0x14e   : > { %v3701_v36 = vpop.f32.mrb[8].mxu0 }
 0x14f   : > { %v3723_v37 = vpop.f32.mrb[8].mxu1  ;;  %v3702_v38 = vpop.f32.mrb[9].mxu0 }
 0x150   : > { %v3703_v39 = vadd.f32 %v3702_v38, %v3701_v36  ;;  %v3724_v40 = vpop.f32.mrb[9].mxu1  ;;  %v3704_v41 = vpop.f32.mrb[10].mxu0 }
 0x151   : > { %v3725_v42 = vadd.f32 %v3724_v40, %v3723_v37  ;;  %v3726_v43 = vpop.f32.mrb[10].mxu1  ;;  %v3705_v44 = vpop.f32.mrb[11].mxu0 }
 0x152   : > { %v2742_v45 = vadd.f32 %v3703_v39, %v2702_v35  ;;  %v3727_v46 = vpop.f32.mrb[11].mxu1  ;;  %v386_v43 = vld [vmem:[#allocation2] sm:$0xff] }
 0x154   : > { %v2782_v47 = vadd.f32 %v3725_v42, %v2742_v45 }
 0x16e   : > { %v3745_v48 = vpop.f32.mrb[12].mxu0 }
 0x16f   : > { %v3767_v49 = vpop.f32.mrb[12].mxu1  ;;  %v3746_v50 = vpop.f32.mrb[13].mxu0 }
 0x170   : > { %v3747_v51 = vadd.f32 %v3746_v50, %v3745_v48  ;;  %v3768_v52 = vpop.f32.mrb[13].mxu1  ;;  %v3748_v53 = vpop.f32.mrb[14].mxu0 }
 0x171   : > { %v3769_v54 = vadd.f32 %v3768_v52, %v3767_v49  ;;  %v3770_v55 = vpop.f32.mrb[14].mxu1  ;;  %v3749_v56 = vpop.f32.mrb[15].mxu0 }
 0x172   : > { %v2822_v19 = vadd.f32 %v3747_v51, %v2782_v47  ;;  %v3771_v57 = vpop.f32.mrb[15].mxu1  ;;  %v3592_v47 = vld [vmem:[%s4742_s2] ss:$0 sm:$0xff] (!%p3591_p7) }
 0x174   : > { %v2862_v58 = vadd.f32 %v3769_v54, %v2822_v19 }
 0x18e   : > { %v3789_v59 = vpop.f32.mrb[16].mxu0 }
 0x18f   : > { %v3811_v60 = vpop.f32.mrb[16].mxu1  ;;  %v3790_v61 = vpop.f32.mrb[17].mxu0 }
 0x190   : > { %v3791_v62 = vadd.f32 %v3790_v61, %v3789_v59  ;;  %v3812_v63 = vpop.f32.mrb[17].mxu1  ;;  %v3792_v0 = vpop.f32.mrb[18].mxu0 }
 0x191   : > { %v3813_v1 = vadd.f32 %v3812_v63, %v3811_v60  ;;  %v3814_v2 = vpop.f32.mrb[18].mxu1  ;;  %v3793_v3 = vpop.f32.mrb[19].mxu0 }
 0x192   : > { %v2902_v4 = vadd.f32 %v3791_v62, %v2862_v58  ;;  %v3815_v5 = vpop.f32.mrb[19].mxu1 }
 0x194   : > { %v2942_v6 = vadd.f32 %v3813_v1, %v2902_v4 }
 0x1ae   : > { %v3833_v7 = vpop.f32.mrb[20].mxu0 }
 0x1af   : > { %v3855_v8 = vpop.f32.mrb[20].mxu1  ;;  %v3834_v9 = vpop.f32.mrb[21].mxu0 }
 0x1b0   : > { %v3835_v10 = vadd.f32 %v3834_v9, %v3833_v7  ;;  %v3856_v11 = vpop.f32.mrb[21].mxu1  ;;  %v3836_v12 = vpop.f32.mrb[22].mxu0 }
 0x1b1   : > { %v3857_v13 = vadd.f32 %v3856_v11, %v3855_v8  ;;  %v3858_v14 = vpop.f32.mrb[22].mxu1  ;;  %v3837_v25 = vpop.f32.mrb[23].mxu0 }
 0x1b2   : > { %v2982_v15 = vadd.f32 %v3835_v10, %v2942_v6  ;;  %v3859_v16 = vpop.f32.mrb[23].mxu1 }
 0x1b4   : > { %v3022_v17 = vadd.f32 %v3857_v13, %v2982_v15 }
 0x1ce   : > { %v3877_v18 = vpop.f32.mrb[24].mxu0 }
 0x1cf   : > { %v3899_v20 = vpop.f32.mrb[24].mxu1  ;;  %v3878_v21 = vpop.f32.mrb[25].mxu0 }
 0x1d0   : > { %v3879_v22 = vadd.f32 %v3878_v21, %v3877_v18  ;;  %v3900_v23 = vpop.f32.mrb[25].mxu1  ;;  %v3880_v24 = vpop.f32.mrb[26].mxu0 }
 0x1d1   : > { %v3901_v26 = vadd.f32 %v3900_v23, %v3899_v20  ;;  %v3902_v27 = vpop.f32.mrb[26].mxu1  ;;  %v3881_v28 = vpop.f32.mrb[27].mxu0 }
 0x1d2   : > { %v3062_v29 = vadd.f32 %v3879_v22, %v3022_v17  ;;  %v3903_v30 = vpop.f32.mrb[27].mxu1 }
 0x1d4   : > { %v3102_v31 = vadd.f32 %v3901_v26, %v3062_v29 }
 0x1ee   : > { %v3921_v32 = vpop.f32.mrb[28].mxu0 }
 0x1ef   : > { %v3943_v33 = vpop.f32.mrb[28].mxu1  ;;  %v3922_v34 = vpop.f32.mrb[29].mxu0 }
 0x1f0   : > { %v3923_v35 = vadd.f32 %v3922_v34, %v3921_v32  ;;  %v3944_v36 = vpop.f32.mrb[29].mxu1  ;;  %v3924_v37 = vpop.f32.mrb[30].mxu0 }
 0x1f1   : > { %v3945_v38 = vadd.f32 %v3944_v36, %v3943_v33  ;;  %v3946_v39 = vpop.f32.mrb[30].mxu1  ;;  %v3925_v40 = vpop.f32.mrb[31].mxu0 }
 0x1f2   : > { %v3142_v41 = vadd.f32 %v3923_v35, %v3102_v31  ;;  %v3947_v42 = vpop.f32.mrb[31].mxu1  ;;  %3193 = sbr.rel (%p3591_p7) target bundleno = 831 (0x33f), region = 40 }
 0x1f4   : > { %v3182_v44 = vadd.f32 %v3945_v38, %v3142_v41 }
 0x1f6   : > { %v3187_v45 = vadd.f32 %v3182_v44, %v386_v43 }
 0x1f8   : > { %3189 = vst.msk [vmem:[#allocation2] sm:$0xff] %vm3188_vm1, %v3187_v45 }
 0x1ff   : > { %v3194_v46 = vld [vmem:[#allocation2] sm:$0xff] }
 0x200   : > { %v3202_v48 = vadd.f32 %v3592_v47, %v3194_v46 }
 0x202   : > { %v3203_v49 = vsel %vm3188_vm1, %v3202_v48, -inf }
 0x203   : > { %3204 = vmax.xlane.f32.xlu0 %v3203_v49 }
 0x290   : > { %v3205_v50 = vpop.xlane.xlu0 %3204 }
 0x291   : > { %v3206_v51 = vsub.f32 %v3202_v48, %v3205_v50 }
 0x293   : > { %v3207_v52 = vmul.f32 1.442695, %v3206_v51 }
 0x295   : > { %4237 = vpow2.f32 %v3207_v52 }
 0x29f   : > { %v4238_v53 = vpop.eup %4237 }
 0x2a0   : > { %v3209_v54 = vsel %vm3188_vm1, %v4238_v53, 0.0 }
 0x2a1   : > { %3210 = vadd.xlane.f32.xlu0 %v3209_v54 }
 0x32e   : > { %v3211_v55 = vpop.xlane.xlu0 %3210 }
 0x32f   : > { %4239 = vlog2.f32 %v3211_v55 }
 0x339   : > { %v4240_v56 = vpop.eup %4239 }
 0x33a   : > { %v3213_v19 = vmul.f32 0.6931472, %v4240_v56 }
 0x33c   : > { %v3214_v57 = vsub.f32 %v3206_v51, %v3213_v19 }
 0x33e   : > { %3215 = vst.msk [vmem:[#allocation2] sm:$0xff] %vm3188_vm1, %v3214_v57 }
 0x33f PF: > { %p4705_p8 = scmp.eq.s32.totalorder %s3293_s15, 1  ;;  %s4296_s4 = smov [#allocation2]  }
 0x340   : > { %s3225_s5 = sshll.u32 %s4296_s4, 4  ;;  %s3226_s5 = int_to_ptr.vmem [resolvable:$true] %s3225_s5 }
 0x341   : > { %s4241_s6 = scalar_lea.vmem %s3226_s5, 128  ;;  %p4248_p12 = scmp.lt.s32.totalorder %s3226_s5, %s3226_s5 }
 0x342   : > { %p4242_p9 = scmp.ne.s32.totalorder %s3226_s5, %s4241_s6  ;;  %p4249_p13 = scmp.lt.s32.totalorder %s4241_s6, %s4241_s6 }
 0x344   : > { %p4243_p10 = pnand %p4242_p9, %p4705_p8  ;;  %p4250_p0 = por %p4249_p13, %p4248_p12 }
 0x346   : > { %p4244_p11 = pneg %p4243_p10 }
 0x348   : > { %p4251_p1 = pnand %p4250_p0, %p4244_p11 }
 0x34a   : > { %4254 = shalt.err (!%p4251_p1)
}
 0x34b   : > { %s4255_s9 = scalar_lea.hbm %s4743_s3, 128 }
 0x34c   : > { %p4256_p2 = scmp.ne.s32.totalorder %s4743_s3, %s4255_s9  ;;  %p4261_p5 = scmp.lt.u32.totalorder %s4255_s9, %s4743_s3 }
 0x34e   : > { %p4257_p3 = pnand %p4256_p2, %p4705_p8 }
 0x350   : > { %p4258_p4 = pneg %p4257_p3 }
 0x352   : > { %p4263_p6 = pnand %p4261_p5, %p4258_p4 }
 0x354   : > { %4266 = shalt.err (!%p4263_p6)
}
 0x355   : > { %3950 = dma.vmem_to_hbm [thread:$0]  (%p4705_p8), %s3226_s5, 128, %s4743_s3, [#allocation3]  }
 0x356   : > { %4280 = dma.done.wait (%p4705_p8), [#allocation3], 128  }
 0x357   : > { %4282 = vsyncadd (%p4705_p8), [#allocation3], 4294967168 }
 0x358 PF: > { %s14_s14 = sadd.s32 1, %s4293_s14   ;;  %s4745_s12 = smov %s4289_s13 }
 0x359   : > { %p11_p7 = scmp.ge.s32.totalorder %s14_s14, 4   ;;  %s4746_s13 = smov %s4748_s16 }
 0x35b   :  { %13 = sbr.rel (!%p11_p7) target bundleno = 2 (0x2), region = 71 }
 0x362   :  { %3238 = vsyncpa [#allocation3], 1 }
 0x363   :  { %3240 = vsyncpa [#allocation3 + $0x1], 1 }

</bundles_post_ra>
